<compile_context>
chip_gen: v7x
topology: tpu7x:2x2x1
jax: 0.10.0
libtpu: 0.0.40
codegen_flags: <defaults>
</compile_context>

<pallas_src>
import functools

import jax
import jax.numpy as jnp
from jax.experimental import pallas as pl
from jax.experimental.pallas import tpu as pltpu


# ---------------------------------------------------------------------------
# Pallas kernel: one grid step == one node row-panel x one block of `tp` periods.
# ---------------------------------------------------------------------------
def _a3tgcn_kernel(*refs, batch, fi, fo_p, n_gates, tp, has_hidden):
    """Rows are nodes of the panel; gate/GRU slabs are (nb, fo_p) with fo_p a multiple
    of 128.  The output block (B, nb, fo_p) is resident across the time grid axis and
    accumulates softmax(attention)[p] * H_p."""
    if has_hidden:
        (probs_ref, x_ref, a_ref, w_ref, b_ref,
         hzr_ref, h0_ref, wh_ref, out_ref) = refs
    else:
        probs_ref, x_ref, a_ref, w_ref, b_ref, out_ref = refs

    t = pl.program_id(1)                      # time-block index (reduction axis)

    @pl.when(t == 0)
    def _init():
        out_ref[...] = jnp.zeros_like(out_ref)

    a = a_ref[...]                            # (nb, N)              bf16
    nb = a.shape[0]

    # (1) graph aggregation for ALL periods and batches of this time block in a
    #     single wide MXU matmul (lanes = tp*B*Fi, contraction = all N source nodes).
    xa = jnp.dot(a, x_ref[...], preferred_element_type=jnp.float32)   # (nb, tp*B*Fi)

    w = w_ref[...]                            # (Fi, nG*Fo_p)        bf16 (compact)
    # Hoisted bias broadcast (JAX does not CSE broadcast_in_dim inside the loops).
    bias = jnp.broadcast_to(b_ref[...], (nb, n_gates * fo_p))         # (nb, nG*Fo_p)
    if has_hidden:
        wh = wh_ref[...]                      # (Fo_p, Fo_p)         bf16 (compact)

    # Static Python loops: the per-(period, batch) lane slices of `xa` must have
    # static offsets.  Per-iteration intermediates are per-batch sized (nb, nG*Fo_p)
    # and feed straight into the accumulator, so live ranges stay small.
    for b in range(batch):
        if has_hidden:
            h0b = h0_ref[b]                   # (nb, Fo_p)  f32
            hzr_b = hzr_ref[b]                # (nb, 2*Fo_p) hoisted H @ W_{z,r}^hidden
            hzb = hzr_b[:, :fo_p]
            hrb = hzr_b[:, fo_p:]
        acc = jnp.zeros((nb, fo_p), jnp.float32)
        for p in range(tp):
            lane0 = (p * batch + b) * fi
            xab = xa[:, lane0:lane0 + fi].astype(w.dtype)              # (nb, Fi)
            # (2) fused gate projection: GCNConv weight folded with the conv half of
            #     the GRU linear layers, all gates in one compact-weight matmul.
            pre = jnp.dot(xab, w, preferred_element_type=jnp.float32) + bias
            if has_hidden:
                z = jax.nn.sigmoid(pre[:, :fo_p] + hzb)                # update gate
                r = jax.nn.sigmoid(pre[:, fo_p:2 * fo_p] + hrb)        # reset gate
                hh = jnp.dot((h0b * r).astype(wh.dtype), wh,
                             preferred_element_type=jnp.float32)
                h_tilde = jnp.tanh(pre[:, 2 * fo_p:] + hh)             # candidate
                h_new = z * h0b + (1.0 - z) * h_tilde
            else:
                # H == 0: the z*H term and all hidden projections are exactly zero and
                # the r gate is never consumed -> only the z and h gates are computed.
                z = jax.nn.sigmoid(pre[:, :fo_p])
                h_tilde = jnp.tanh(pre[:, fo_p:])
                h_new = (1.0 - z) * h_tilde
            acc = acc + probs_ref[t * tp + p] * h_new                  # attention
        out_ref[b] += acc


# ---------------------------------------------------------------------------
# Glue: dense symmetric GCN normalization (gcn_norm with self loops), params.
# ---------------------------------------------------------------------------
def gcn_norm_dense(edge_index, edge_weight, num_nodes,
                   improved=False, add_self_loops=True):
    """One-time plain-JAX glue; precompute/cache this for repeated forwards."""
    src, dst = edge_index[0], edge_index[1]
    if edge_weight is None:
        edge_weight = jnp.ones((edge_index.shape[1],), jnp.float32)
    adj = jnp.zeros((num_nodes, num_nodes), jnp.float32)
    adj = adj.at[dst, src].add(edge_weight)            # A[i, j] = weight of edge j -> i
    if add_self_loops:
        fill = 2.0 if improved else 1.0
        adj = adj + fill * jnp.eye(num_nodes, dtype=jnp.float32)
    deg = adj.sum(axis=1)
    dinv = jnp.where(deg > 0, 1.0 / jnp.sqrt(deg), 0.0)
    return dinv[:, None] * adj * dinv[None, :]         # D^-1/2 (A + I) D^-1/2


def init_params(key, in_channels, out_channels, periods):
    ks = jax.random.split(key, 5)
    sc = 1.0 / jnp.sqrt(jnp.float32(in_channels))
    sl = 1.0 / jnp.sqrt(jnp.float32(2 * out_channels))
    return dict(
        wc=jax.random.uniform(ks[0], (3, out_channels, in_channels), jnp.float32, -sc, sc),
        bc=jax.random.uniform(ks[1], (3, 1, out_channels), jnp.float32, -sc, sc),
        wl=jax.random.uniform(ks[2], (3, out_channels, 2 * out_channels), jnp.float32, -sl, sl),
        bl=jax.random.uniform(ks[3], (3, 1, out_channels), jnp.float32, -sl, sl),
        attention=jax.random.uniform(ks[4], (periods,), jnp.float32, 0.0, 1.0),
    )


# ---------------------------------------------------------------------------
# Small sizing helpers.
# ---------------------------------------------------------------------------
def _round_up(x, m):
    return ((x + m - 1) // m) * m


def _pick_periods_per_step(T, B, Fi, N, budget_bytes=8 << 20):
    """Largest divisor of T whose (double-buffered, bf16) X block fits the budget and
    whose lane width is 128-aligned (or covers all periods)."""
    valid = [c for c in range(1, T + 1)
             if T % c == 0 and (((c * B * Fi) % 128 == 0) or c == T)]
    fitting = [c for c in valid if 2 * N * c * B * Fi * 2 <= budget_bytes]
    return max(fitting) if fitting else min(valid)


def _make_spec(shape, index_map, single_buffer=False):
    """Single-buffer time-invariant inputs (frees VMEM, useful on v7x's 64 MiB)."""
    if single_buffer:
        return pl.BlockSpec(shape, index_map, pipeline_mode=pl.Buffered(1))
    return pl.BlockSpec(shape, index_map)


# ---------------------------------------------------------------------------
# Wrapper: A3TGCN2.forward
# ---------------------------------------------------------------------------
def a3tgcn2_forward(x_bnft, edge_index, edge_weight, params, H=None, *,
                    a_hat=None, node_blocks=None, periods_per_step=None,
                    compute_dtype=jnp.bfloat16, single_buffer_invariants=False):
    B, N, Fi, T = x_bnft.shape
    Fo = params['wc'].shape[1]
    Fo_p = _round_up(Fo, 128)                 # lane-dense gate slabs / output stores
    has_hidden = H is not None
    f32 = jnp.float32

    # --- grid sizing --------------------------------------------------------
    tp = _pick_periods_per_step(T, B, Fi, N) if periods_per_step is None else periods_per_step
    assert T % tp == 0, "periods_per_step must divide the number of periods"
    assert (tp * B * Fi) % 128 == 0 or tp == T, \
        "X time-block lane width must be a multiple of 128 (or cover all periods)"

    if node_blocks is None:
        # >=2 panels feed both v7x TensorCores; 1 on small graphs / 1-TC chips.
        node_blocks = 2 if (N >= 512 and N % 32 == 0) else 1
    G = node_blocks
    assert N % G == 0, "node_blocks must divide the number of nodes"
    nb = N // G
    if G > 1:
        assert nb % 16 == 0, "bf16 node panels need row counts that are multiples of 16"

    wc = params['wc'].astype(f32)             # (3, Fo, Fi)
    bc = params['bc'].astype(f32)             # (3, 1, Fo)
    wl = params['wl'].astype(f32)             # (3, Fo, 2*Fo)
    bl = params['bl'].astype(f32)             # (3, 1, Fo)

    # --- loop-invariant precompute (done once, outside the kernel) -----------
    gates = (0, 1, 2) if has_hidden else (0, 2)          # z, r, h   /   z, h
    nG = len(gates)
    pad_o = ((0, 0), (0, Fo_p - Fo))
    # compact folded conv-path weight per gate: Wc_g^T @ Wl_g[:, :Fo]^T : (Fi, Fo_p)
    w_cat = jnp.concatenate(
        [jnp.pad(wc[g].T @ wl[g, :, :Fo].T, pad_o) for g in gates], axis=1)     # (Fi, nG*Fo_p)
    # compact folded conv-path bias: bc_g @ Wl_g[:, :Fo]^T + bl_g
    b_cat = jnp.concatenate(
        [jnp.pad((bc[g] @ wl[g, :, :Fo].T + bl[g])[0], (0, Fo_p - Fo)) for g in gates]
    )[None, :]                                                                   # (1, nG*Fo_p)

    probs = jax.nn.softmax(params['attention'].astype(f32))                      # (T,)

    # X: (B, N, Fi, T) -> (N, T, B, Fi) -> (N, T*B*Fi)  (lane order: period, batch, feat)
    x_l = jnp.transpose(x_bnft.astype(f32), (1, 3, 0, 2)).reshape(N, T * B * Fi)
    if a_hat is None:
        a_hat = gcn_norm_dense(edge_index, edge_weight, N)

    lanes_x = tp * B * Fi
    inputs = [probs,
              x_l.astype(compute_dtype),
              a_hat.astype(compute_dtype),
              w_cat.astype(compute_dtype),
              b_cat]
    in_specs = [
        pl.BlockSpec(memory_space=pltpu.MemorySpace.SMEM),                       # probs (T,)
        pl.BlockSpec((N, lanes_x), lambda i, t: (0, t)),                         # X time block
        _make_spec((nb, N), lambda i, t: (i, 0), single_buffer_invariants),      # A_hat panel
        _make_spec((Fi, nG * Fo_p), lambda i, t: (0, 0), single_buffer_invariants),
        _make_spec((1, nG * Fo_p), lambda i, t: (0, 0), single_buffer_invariants),
    ]

    if has_hidden:
        Hf = H.astype(f32)                                                       # (B, N, Fo)
        pad3 = ((0, 0), (0, 0), (0, Fo_p - Fo))
        h0 = jnp.pad(Hf, pad3)                                                   # (B, N, Fo_p)
        # hoisted (loop-invariant) hidden-half projections for the z and r gates
        hz = jnp.pad(jnp.einsum('bno,po->bnp', Hf, wl[0, :, Fo:]), pad3)
        hr = jnp.pad(jnp.einsum('bno,po->bnp', Hf, wl[1, :, Fo:]), pad3)
        hzr = jnp.concatenate([hz, hr], axis=-1)                                 # (B, N, 2*Fo_p)
        # compact h-gate hidden weight (rows = hidden channel, cols = output channel)
        wh = jnp.pad(wl[2][:, Fo:].T, ((0, Fo_p - Fo), (0, Fo_p - Fo)))          # (Fo_p, Fo_p)
        inputs += [hzr, h0, wh.astype(compute_dtype)]
        in_specs += [
            _make_spec((B, nb, 2 * Fo_p), lambda i, t: (0, i, 0), single_buffer_invariants),
            _make_spec((B, nb, Fo_p), lambda i, t: (0, i, 0), single_buffer_invariants),
            _make_spec((Fo_p, Fo_p), lambda i, t: (0, 0), single_buffer_invariants),
        ]

    # --- explicit VMEM budget (review: do not rely on the default scoped limit) ----
    bpe = jnp.dtype(compute_dtype).itemsize
    x_blk = N * lanes_x * bpe
    a_blk = nb * N * bpe
    w_blk = Fi * nG * Fo_p * bpe + nG * Fo_p * 4
    out_blk = B * nb * Fo_p * 4
    hid_blk = (B * nb * 3 * Fo_p * 4 + Fo_p * Fo_p * bpe) if has_hidden else 0
    footprint = 2 * (x_blk + a_blk + w_blk + out_blk + hid_blk)     # <=2 buffers each
    vmem_limit = int(min(max(2 * footprint + (8 << 20), 32 << 20), 96 << 20))

    kernel = functools.partial(_a3tgcn_kernel, batch=B, fi=Fi, fo_p=Fo_p,
                               n_gates=nG, tp=tp, has_hidden=has_hidden)

    out = pl.pallas_call(
        kernel,
        out_shape=jax.ShapeDtypeStruct((B, N, Fo_p), jnp.float32),
        grid_spec=pltpu.PrefetchScalarGridSpec(
            num_scalar_prefetch=0,
            grid=(G, T // tp),
            in_specs=in_specs,
            out_specs=pl.BlockSpec((B, nb, Fo_p), lambda i, t: (0, i, 0)),       # resident acc
        ),
        compiler_params=pltpu.CompilerParams(
            dimension_semantics=("parallel", "arbitrary"),
            vmem_limit_bytes=vmem_limit),
    )(*inputs)

    return out[:, :, :Fo]                                                        # (B, N, Fo)


# ---------------------------------------------------------------------------
# Pure-JAX reference (mirrors the PyTorch semantics) for a sanity check.
# ---------------------------------------------------------------------------
def reference_forward(x_bnft, a_hat, params, H=None):
    B, N, Fi, T = x_bnft.shape
    Fo = params['wc'].shape[1]
    h = jnp.zeros((B, N, Fo), jnp.float32) if H is None else H.astype(jnp.float32)
    probs = jax.nn.softmax(params['attention'])

    def gcn(g, xp):
        xw = jnp.einsum('bni,oi->bno', xp, params['wc'][g])
        return jnp.einsum('nm,bmo->bno', a_hat, xw) + params['bc'][g]

    def lin(g, c, hh):
        w = params['wl'][g]
        return (jnp.einsum('bno,po->bnp', c, w[:, :Fo])
                + jnp.einsum('bno,po->bnp', hh, w[:, Fo:]) + params['bl'][g])

    acc = jnp.zeros((B, N, Fo), jnp.float32)
    for p in range(T):
        xp = x_bnft[:, :, :, p]
        z = jax.nn.sigmoid(lin(0, gcn(0, xp), h))
        r = jax.nn.sigmoid(lin(1, gcn(1, xp), h))
        ht = jnp.tanh(lin(2, gcn(2, xp), h * r))
        acc = acc + probs[p] * (z * h + (1.0 - z) * ht)
    return acc


if __name__ == "__main__":
    key = jax.random.PRNGKey(0)
    B, N, Fi, Fo, T = 2, 16, 4, 32, 8     # batch, nodes, in_channels, out_channels, periods
    kx, kw, kp, kh = jax.random.split(key, 4)

    x = jax.random.normal(kx, (B, N, Fi, T), jnp.float32)          # X: (B, N, F_in, periods)

    # Deterministic bidirectional ring graph with random positive weights.
    src = jnp.arange(N, dtype=jnp.int32)
    dst = (src + 1) % N
    edge_index = jnp.stack([jnp.concatenate([src, dst]),
                            jnp.concatenate([dst, src])], axis=0)   # (2, 2N)
    edge_weight = jax.random.uniform(kw, (edge_index.shape[1],), jnp.float32, 0.5, 1.5)

    params = init_params(kp, Fi, Fo, T)
    a_hat = gcn_norm_dense(edge_index, edge_weight, N)

    # H = None (common call pattern; kernel specializes away the r gate / hidden path).
    out = jax.block_until_ready(a3tgcn2_forward(x, edge_index, edge_weight, params))
    ref = reference_forward(x, a_hat, params)
    assert out.shape == (B, N, Fo)
    err = float(jnp.max(jnp.abs(out - ref)))
    # bf16 matmul inputs (f32 accumulation) -> slightly looser tolerance than pure f32.
    assert jnp.allclose(out, ref, atol=3e-2, rtol=3e-2), err

    # Explicit initial hidden state (exercises the full 3-gate path).
    H0 = 0.5 * jax.random.normal(kh, (B, N, Fo), jnp.float32)
    out_h = jax.block_until_ready(
        a3tgcn2_forward(x, edge_index, edge_weight, params, H=H0))
    ref_h = reference_forward(x, a_hat, params, H=H0)
    err_h = float(jnp.max(jnp.abs(out_h - ref_h)))
    assert jnp.allclose(out_h, ref_h, atol=3e-2, rtol=3e-2), err_h

    print("KERNEL_OK")
</pallas_src>

<mosaic_0001>
module attributes {stable_mosaic.version = 11 : i64} {
  func.func @_a3tgcn_kernel(%arg0: i32, %arg1: i32, %arg2: memref<8xf32, #tpu.memory_space<smem>>, %arg3: memref<16x64xbf16, #tpu.memory_space<vmem>>, %arg4: memref<16x16xbf16, #tpu.memory_space<vmem>>, %arg5: memref<4x256xbf16, #tpu.memory_space<vmem>>, %arg6: memref<1x256xf32, #tpu.memory_space<vmem>>, %arg7: memref<2x16x128xf32, #tpu.memory_space<vmem>>) attributes {dimension_semantics = [#tpu.dimension_semantics<parallel>, #tpu.dimension_semantics<arbitrary>], iteration_bounds = array<i64: 1, 1>, scalar_prefetch = 0 : i64, scratch_operands = 0 : i64, tpu.core_type = #tpu.core_type<tc>, window_params = [{transform_indices = @transform_0, window_bounds = array<i64: 8>}, {transform_indices = @transform_1, window_bounds = array<i64: 16, 64>}, {transform_indices = @transform_2, window_bounds = array<i64: 16, 16>}, {pipeline_mode = #tpu.pipeline_mode<synchronous>, transform_indices = @transform_3, window_bounds = array<i64: 4, 256>}, {pipeline_mode = #tpu.pipeline_mode<synchronous>, transform_indices = @transform_4, window_bounds = array<i64: 1, 256>}, {transform_indices = @transform_5, window_bounds = array<i64: 2, 16, 128>}]} {
    %c0_i32 = arith.constant 0 : i32
    %0 = arith.cmpi eq, %arg1, %c0_i32 : i32
    %1 = arith.extui %0 : i1 to i32
    %c0_i32_0 = arith.constant 0 : i32
    %2 = arith.cmpi ne, %1, %c0_i32_0 : i32
    scf.if %2 {
      %cst_93 = arith.constant 0.000000e+00 : f32
      %376 = vector.broadcast %cst_93 : f32 to vector<2x16x128xf32>
      %c0_94 = arith.constant 0 : index
      %c0_95 = arith.constant 0 : index
      %c0_96 = arith.constant 0 : index
      %377 = vector.load %arg7[%c0_94, %c0_95, %c0_96] : memref<2x16x128xf32, #tpu.memory_space<vmem>>, vector<2x16x128xf32>
      tpu.vector_store %arg7[%c0_94, %c0_95, %c0_96], %376 {strides = array<i32>} : memref<2x16x128xf32, #tpu.memory_space<vmem>>, vector<2x16x128xf32>,
    } else {
    }
    %c0 = arith.constant 0 : index
    %c0_1 = arith.constant 0 : index
    %3 = vector.load %arg4[%c0, %c0_1] : memref<16x16xbf16, #tpu.memory_space<vmem>>, vector<16x16xbf16>
    %c0_2 = arith.constant 0 : index
    %c0_3 = arith.constant 0 : index
    %4 = vector.load %arg3[%c0_2, %c0_3] : memref<16x64xbf16, #tpu.memory_space<vmem>>, vector<16x64xbf16>
    %cst = arith.constant dense<0.000000e+00> : vector<16x64xf32>
    %5 = tpu.matmul %3, %4, %cst {dimension_numbers = #tpu.dot_dimension_numbers<[1], [0], [0], [1], [0, 0, 1, 1], [], []>} : vector<16x16xbf16>, vector<16x64xbf16>, vector<16x64xf32> -> vector<16x64xf32>
    %c0_4 = arith.constant 0 : index
    %c0_5 = arith.constant 0 : index
    %6 = vector.load %arg5[%c0_4, %c0_5] : memref<4x256xbf16, #tpu.memory_space<vmem>>, vector<4x256xbf16>
    %c0_6 = arith.constant 0 : index
    %c0_7 = arith.constant 0 : index
    %7 = vector.load %arg6[%c0_6, %c0_7] : memref<1x256xf32, #tpu.memory_space<vmem>>, vector<1x256xf32>
    %8 = vector.shape_cast %7 : vector<1x256xf32> to vector<1x256xf32>
    %9 = vector.broadcast %8 : vector<1x256xf32> to vector<16x256xf32>
    %cst_8 = arith.constant 0.000000e+00 : f32
    %10 = vector.broadcast %cst_8 : f32 to vector<16x128xf32>
    %11 = vector.extract_strided_slice %5 {offsets = [0, 0], sizes = [16, 4], strides = [1, 1]} : vector<16x64xf32> to vector<16x4xf32>
    %12 = arith.truncf %11 : vector<16x4xf32> to vector<16x4xbf16>
    %cst_9 = arith.constant dense<0.000000e+00> : vector<16x256xf32>
    %13 = tpu.matmul %12, %6, %cst_9 {dimension_numbers = #tpu.dot_dimension_numbers<[1], [0], [0], [1], [0, 0, 1, 1], [], []>} : vector<16x4xbf16>, vector<4x256xbf16>, vector<16x256xf32> -> vector<16x256xf32>
    %14 = arith.addf %13, %9 : vector<16x256xf32>
    %15 = vector.extract_strided_slice %14 {offsets = [0, 0], sizes = [16, 128], strides = [1, 1]} : vector<16x256xf32> to vector<16x128xf32>
    %16 = arith.negf %15 : vector<16x128xf32>
    %17 = math.exp %16 : vector<16x128xf32>
    %cst_10 = arith.constant 1.000000e+00 : f32
    %18 = vector.broadcast %cst_10 : f32 to vector<16x128xf32>
    %19 = arith.addf %18, %17 : vector<16x128xf32>
    %20 = arith.divf %18, %19 : vector<16x128xf32>
    %21 = vector.extract_strided_slice %14 {offsets = [0, 128], sizes = [16, 128], strides = [1, 1]} : vector<16x256xf32> to vector<16x128xf32>
    %22 = math.tanh %21 : vector<16x128xf32>
    %cst_11 = arith.constant 1.000000e+00 : f32
    %23 = vector.broadcast %cst_11 : f32 to vector<16x128xf32>
    %24 = arith.subf %23, %20 : vector<16x128xf32>
    %25 = arith.mulf %24, %22 : vector<16x128xf32>
    %c8_i32 = arith.constant 8 : i32
    %26 = arith.muli %arg1, %c8_i32 : i32
    %c0_i32_12 = arith.constant 0 : i32
    %27 = arith.addi %26, %c0_i32_12 : i32
    %28 = arith.index_cast %27 : i32 to index
    %29 = memref.load %arg2[%28] : memref<8xf32, #tpu.memory_space<smem>>
    %30 = vector.broadcast %29 : f32 to vector<16x128xf32>
    %31 = arith.mulf %30, %25 : vector<16x128xf32>
    %32 = arith.addf %10, %31 : vector<16x128xf32>
    %33 = vector.extract_strided_slice %5 {offsets = [0, 8], sizes = [16, 4], strides = [1, 1]} : vector<16x64xf32> to vector<16x4xf32>
    %34 = arith.truncf %33 : vector<16x4xf32> to vector<16x4xbf16>
    %cst_13 = arith.constant dense<0.000000e+00> : vector<16x256xf32>
    %35 = tpu.matmul %34, %6, %cst_13 {dimension_numbers = #tpu.dot_dimension_numbers<[1], [0], [0], [1], [0, 0, 1, 1], [], []>} : vector<16x4xbf16>, vector<4x256xbf16>, vector<16x256xf32> -> vector<16x256xf32>
    %36 = arith.addf %35, %9 : vector<16x256xf32>
    %37 = vector.extract_strided_slice %36 {offsets = [0, 0], sizes = [16, 128], strides = [1, 1]} : vector<16x256xf32> to vector<16x128xf32>
    %38 = arith.negf %37 : vector<16x128xf32>
    %39 = math.exp %38 : vector<16x128xf32>
    %cst_14 = arith.constant 1.000000e+00 : f32
    %40 = vector.broadcast %cst_14 : f32 to vector<16x128xf32>
    %41 = arith.addf %40, %39 : vector<16x128xf32>
    %42 = arith.divf %40, %41 : vector<16x128xf32>
    %43 = vector.extract_strided_slice %36 {offsets = [0, 128], sizes = [16, 128], strides = [1, 1]} : vector<16x256xf32> to vector<16x128xf32>
    %44 = math.tanh %43 : vector<16x128xf32>
    %cst_15 = arith.constant 1.000000e+00 : f32
    %45 = vector.broadcast %cst_15 : f32 to vector<16x128xf32>
    %46 = arith.subf %45, %42 : vector<16x128xf32>
    %47 = arith.mulf %46, %44 : vector<16x128xf32>
    %c8_i32_16 = arith.constant 8 : i32
    %48 = arith.muli %arg1, %c8_i32_16 : i32
    %c1_i32 = arith.constant 1 : i32
    %49 = arith.addi %48, %c1_i32 : i32
    %50 = arith.index_cast %49 : i32 to index
    %51 = memref.load %arg2[%50] : memref<8xf32, #tpu.memory_space<smem>>
    %52 = vector.broadcast %51 : f32 to vector<16x128xf32>
    %53 = arith.mulf %52, %47 : vector<16x128xf32>
    %54 = arith.addf %32, %53 : vector<16x128xf32>
    %55 = vector.extract_strided_slice %5 {offsets = [0, 16], sizes = [16, 4], strides = [1, 1]} : vector<16x64xf32> to vector<16x4xf32>
    %56 = arith.truncf %55 : vector<16x4xf32> to vector<16x4xbf16>
    %cst_17 = arith.constant dense<0.000000e+00> : vector<16x256xf32>
    %57 = tpu.matmul %56, %6, %cst_17 {dimension_numbers = #tpu.dot_dimension_numbers<[1], [0], [0], [1], [0, 0, 1, 1], [], []>} : vector<16x4xbf16>, vector<4x256xbf16>, vector<16x256xf32> -> vector<16x256xf32>
    %58 = arith.addf %57, %9 : vector<16x256xf32>
    %59 = vector.extract_strided_slice %58 {offsets = [0, 0], sizes = [16, 128], strides = [1, 1]} : vector<16x256xf32> to vector<16x128xf32>
    %60 = arith.negf %59 : vector<16x128xf32>
    %61 = math.exp %60 : vector<16x128xf32>
    %cst_18 = arith.constant 1.000000e+00 : f32
    %62 = vector.broadcast %cst_18 : f32 to vector<16x128xf32>
    %63 = arith.addf %62, %61 : vector<16x128xf32>
    %64 = arith.divf %62, %63 : vector<16x128xf32>
    %65 = vector.extract_strided_slice %58 {offsets = [0, 128], sizes = [16, 128], strides = [1, 1]} : vector<16x256xf32> to vector<16x128xf32>
    %66 = math.tanh %65 : vector<16x128xf32>
    %cst_19 = arith.constant 1.000000e+00 : f32
    %67 = vector.broadcast %cst_19 : f32 to vector<16x128xf32>
    %68 = arith.subf %67, %64 : vector<16x128xf32>
    %69 = arith.mulf %68, %66 : vector<16x128xf32>
    %c8_i32_20 = arith.constant 8 : i32
    %70 = arith.muli %arg1, %c8_i32_20 : i32
    %c2_i32 = arith.constant 2 : i32
    %71 = arith.addi %70, %c2_i32 : i32
    %72 = arith.index_cast %71 : i32 to index
    %73 = memref.load %arg2[%72] : memref<8xf32, #tpu.memory_space<smem>>
    %74 = vector.broadcast %73 : f32 to vector<16x128xf32>
    %75 = arith.mulf %74, %69 : vector<16x128xf32>
    %76 = arith.addf %54, %75 : vector<16x128xf32>
    %77 = vector.extract_strided_slice %5 {offsets = [0, 24], sizes = [16, 4], strides = [1, 1]} : vector<16x64xf32> to vector<16x4xf32>
    %78 = arith.truncf %77 : vector<16x4xf32> to vector<16x4xbf16>
    %cst_21 = arith.constant dense<0.000000e+00> : vector<16x256xf32>
    %79 = tpu.matmul %78, %6, %cst_21 {dimension_numbers = #tpu.dot_dimension_numbers<[1], [0], [0], [1], [0, 0, 1, 1], [], []>} : vector<16x4xbf16>, vector<4x256xbf16>, vector<16x256xf32> -> vector<16x256xf32>
    %80 = arith.addf %79, %9 : vector<16x256xf32>
    %81 = vector.extract_strided_slice %80 {offsets = [0, 0], sizes = [16, 128], strides = [1, 1]} : vector<16x256xf32> to vector<16x128xf32>
    %82 = arith.negf %81 : vector<16x128xf32>
    %83 = math.exp %82 : vector<16x128xf32>
    %cst_22 = arith.constant 1.000000e+00 : f32
    %84 = vector.broadcast %cst_22 : f32 to vector<16x128xf32>
    %85 = arith.addf %84, %83 : vector<16x128xf32>
    %86 = arith.divf %84, %85 : vector<16x128xf32>
    %87 = vector.extract_strided_slice %80 {offsets = [0, 128], sizes = [16, 128], strides = [1, 1]} : vector<16x256xf32> to vector<16x128xf32>
    %88 = math.tanh %87 : vector<16x128xf32>
    %cst_23 = arith.constant 1.000000e+00 : f32
    %89 = vector.broadcast %cst_23 : f32 to vector<16x128xf32>
    %90 = arith.subf %89, %86 : vector<16x128xf32>
    %91 = arith.mulf %90, %88 : vector<16x128xf32>
    %c8_i32_24 = arith.constant 8 : i32
    %92 = arith.muli %arg1, %c8_i32_24 : i32
    %c3_i32 = arith.constant 3 : i32
    %93 = arith.addi %92, %c3_i32 : i32
    %94 = arith.index_cast %93 : i32 to index
    %95 = memref.load %arg2[%94] : memref<8xf32, #tpu.memory_space<smem>>
    %96 = vector.broadcast %95 : f32 to vector<16x128xf32>
    %97 = arith.mulf %96, %91 : vector<16x128xf32>
    %98 = arith.addf %76, %97 : vector<16x128xf32>
    %99 = vector.extract_strided_slice %5 {offsets = [0, 32], sizes = [16, 4], strides = [1, 1]} : vector<16x64xf32> to vector<16x4xf32>
    %100 = arith.truncf %99 : vector<16x4xf32> to vector<16x4xbf16>
    %cst_25 = arith.constant dense<0.000000e+00> : vector<16x256xf32>
    %101 = tpu.matmul %100, %6, %cst_25 {dimension_numbers = #tpu.dot_dimension_numbers<[1], [0], [0], [1], [0, 0, 1, 1], [], []>} : vector<16x4xbf16>, vector<4x256xbf16>, vector<16x256xf32> -> vector<16x256xf32>
    %102 = arith.addf %101, %9 : vector<16x256xf32>
    %103 = vector.extract_strided_slice %102 {offsets = [0, 0], sizes = [16, 128], strides = [1, 1]} : vector<16x256xf32> to vector<16x128xf32>
    %104 = arith.negf %103 : vector<16x128xf32>
    %105 = math.exp %104 : vector<16x128xf32>
    %cst_26 = arith.constant 1.000000e+00 : f32
    %106 = vector.broadcast %cst_26 : f32 to vector<16x128xf32>
    %107 = arith.addf %106, %105 : vector<16x128xf32>
    %108 = arith.divf %106, %107 : vector<16x128xf32>
    %109 = vector.extract_strided_slice %102 {offsets = [0, 128], sizes = [16, 128], strides = [1, 1]} : vector<16x256xf32> to vector<16x128xf32>
    %110 = math.tanh %109 : vector<16x128xf32>
    %cst_27 = arith.constant 1.000000e+00 : f32
    %111 = vector.broadcast %cst_27 : f32 to vector<16x128xf32>
    %112 = arith.subf %111, %108 : vector<16x128xf32>
    %113 = arith.mulf %112, %110 : vector<16x128xf32>
    %c8_i32_28 = arith.constant 8 : i32
    %114 = arith.muli %arg1, %c8_i32_28 : i32
    %c4_i32 = arith.constant 4 : i32
    %115 = arith.addi %114, %c4_i32 : i32
    %116 = arith.index_cast %115 : i32 to index
    %117 = memref.load %arg2[%116] : memref<8xf32, #tpu.memory_space<smem>>
    %118 = vector.broadcast %117 : f32 to vector<16x128xf32>
    %119 = arith.mulf %118, %113 : vector<16x128xf32>
    %120 = arith.addf %98, %119 : vector<16x128xf32>
    %121 = vector.extract_strided_slice %5 {offsets = [0, 40], sizes = [16, 4], strides = [1, 1]} : vector<16x64xf32> to vector<16x4xf32>
    %122 = arith.truncf %121 : vector<16x4xf32> to vector<16x4xbf16>
    %cst_29 = arith.constant dense<0.000000e+00> : vector<16x256xf32>
    %123 = tpu.matmul %122, %6, %cst_29 {dimension_numbers = #tpu.dot_dimension_numbers<[1], [0], [0], [1], [0, 0, 1, 1], [], []>} : vector<16x4xbf16>, vector<4x256xbf16>, vector<16x256xf32> -> vector<16x256xf32>
    %124 = arith.addf %123, %9 : vector<16x256xf32>
    %125 = vector.extract_strided_slice %124 {offsets = [0, 0], sizes = [16, 128], strides = [1, 1]} : vector<16x256xf32> to vector<16x128xf32>
    %126 = arith.negf %125 : vector<16x128xf32>
    %127 = math.exp %126 : vector<16x128xf32>
    %cst_30 = arith.constant 1.000000e+00 : f32
    %128 = vector.broadcast %cst_30 : f32 to vector<16x128xf32>
    %129 = arith.addf %128, %127 : vector<16x128xf32>
    %130 = arith.divf %128, %129 : vector<16x128xf32>
    %131 = vector.extract_strided_slice %124 {offsets = [0, 128], sizes = [16, 128], strides = [1, 1]} : vector<16x256xf32> to vector<16x128xf32>
    %132 = math.tanh %131 : vector<16x128xf32>
    %cst_31 = arith.constant 1.000000e+00 : f32
    %133 = vector.broadcast %cst_31 : f32 to vector<16x128xf32>
    %134 = arith.subf %133, %130 : vector<16x128xf32>
    %135 = arith.mulf %134, %132 : vector<16x128xf32>
    %c8_i32_32 = arith.constant 8 : i32
    %136 = arith.muli %arg1, %c8_i32_32 : i32
    %c5_i32 = arith.constant 5 : i32
    %137 = arith.addi %136, %c5_i32 : i32
    %138 = arith.index_cast %137 : i32 to index
    %139 = memref.load %arg2[%138] : memref<8xf32, #tpu.memory_space<smem>>
    %140 = vector.broadcast %139 : f32 to vector<16x128xf32>
    %141 = arith.mulf %140, %135 : vector<16x128xf32>
    %142 = arith.addf %120, %141 : vector<16x128xf32>
    %143 = vector.extract_strided_slice %5 {offsets = [0, 48], sizes = [16, 4], strides = [1, 1]} : vector<16x64xf32> to vector<16x4xf32>
    %144 = arith.truncf %143 : vector<16x4xf32> to vector<16x4xbf16>
    %cst_33 = arith.constant dense<0.000000e+00> : vector<16x256xf32>
    %145 = tpu.matmul %144, %6, %cst_33 {dimension_numbers = #tpu.dot_dimension_numbers<[1], [0], [0], [1], [0, 0, 1, 1], [], []>} : vector<16x4xbf16>, vector<4x256xbf16>, vector<16x256xf32> -> vector<16x256xf32>
    %146 = arith.addf %145, %9 : vector<16x256xf32>
    %147 = vector.extract_strided_slice %146 {offsets = [0, 0], sizes = [16, 128], strides = [1, 1]} : vector<16x256xf32> to vector<16x128xf32>
    %148 = arith.negf %147 : vector<16x128xf32>
    %149 = math.exp %148 : vector<16x128xf32>
    %cst_34 = arith.constant 1.000000e+00 : f32
    %150 = vector.broadcast %cst_34 : f32 to vector<16x128xf32>
    %151 = arith.addf %150, %149 : vector<16x128xf32>
    %152 = arith.divf %150, %151 : vector<16x128xf32>
    %153 = vector.extract_strided_slice %146 {offsets = [0, 128], sizes = [16, 128], strides = [1, 1]} : vector<16x256xf32> to vector<16x128xf32>
    %154 = math.tanh %153 : vector<16x128xf32>
    %cst_35 = arith.constant 1.000000e+00 : f32
    %155 = vector.broadcast %cst_35 : f32 to vector<16x128xf32>
    %156 = arith.subf %155, %152 : vector<16x128xf32>
    %157 = arith.mulf %156, %154 : vector<16x128xf32>
    %c8_i32_36 = arith.constant 8 : i32
    %158 = arith.muli %arg1, %c8_i32_36 : i32
    %c6_i32 = arith.constant 6 : i32
    %159 = arith.addi %158, %c6_i32 : i32
    %160 = arith.index_cast %159 : i32 to index
    %161 = memref.load %arg2[%160] : memref<8xf32, #tpu.memory_space<smem>>
    %162 = vector.broadcast %161 : f32 to vector<16x128xf32>
    %163 = arith.mulf %162, %157 : vector<16x128xf32>
    %164 = arith.addf %142, %163 : vector<16x128xf32>
    %165 = vector.extract_strided_slice %5 {offsets = [0, 56], sizes = [16, 4], strides = [1, 1]} : vector<16x64xf32> to vector<16x4xf32>
    %166 = arith.truncf %165 : vector<16x4xf32> to vector<16x4xbf16>
    %cst_37 = arith.constant dense<0.000000e+00> : vector<16x256xf32>
    %167 = tpu.matmul %166, %6, %cst_37 {dimension_numbers = #tpu.dot_dimension_numbers<[1], [0], [0], [1], [0, 0, 1, 1], [], []>} : vector<16x4xbf16>, vector<4x256xbf16>, vector<16x256xf32> -> vector<16x256xf32>
    %168 = arith.addf %167, %9 : vector<16x256xf32>
    %169 = vector.extract_strided_slice %168 {offsets = [0, 0], sizes = [16, 128], strides = [1, 1]} : vector<16x256xf32> to vector<16x128xf32>
    %170 = arith.negf %169 : vector<16x128xf32>
    %171 = math.exp %170 : vector<16x128xf32>
    %cst_38 = arith.constant 1.000000e+00 : f32
    %172 = vector.broadcast %cst_38 : f32 to vector<16x128xf32>
    %173 = arith.addf %172, %171 : vector<16x128xf32>
    %174 = arith.divf %172, %173 : vector<16x128xf32>
    %175 = vector.extract_strided_slice %168 {offsets = [0, 128], sizes = [16, 128], strides = [1, 1]} : vector<16x256xf32> to vector<16x128xf32>
    %176 = math.tanh %175 : vector<16x128xf32>
    %cst_39 = arith.constant 1.000000e+00 : f32
    %177 = vector.broadcast %cst_39 : f32 to vector<16x128xf32>
    %178 = arith.subf %177, %174 : vector<16x128xf32>
    %179 = arith.mulf %178, %176 : vector<16x128xf32>
    %c8_i32_40 = arith.constant 8 : i32
    %180 = arith.muli %arg1, %c8_i32_40 : i32
    %c7_i32 = arith.constant 7 : i32
    %181 = arith.addi %180, %c7_i32 : i32
    %182 = arith.index_cast %181 : i32 to index
    %183 = memref.load %arg2[%182] : memref<8xf32, #tpu.memory_space<smem>>
    %184 = vector.broadcast %183 : f32 to vector<16x128xf32>
    %185 = arith.mulf %184, %179 : vector<16x128xf32>
    %186 = arith.addf %164, %185 : vector<16x128xf32>
    %c0_41 = arith.constant 0 : index
    %c0_42 = arith.constant 0 : index
    %c0_43 = arith.constant 0 : index
    %187 = vector.load %arg7[%c0_41, %c0_42, %c0_43] : memref<2x16x128xf32, #tpu.memory_space<vmem>>, vector<1x16x128xf32>
    %188 = vector.shape_cast %187 : vector<1x16x128xf32> to vector<16x128xf32>
    %189 = arith.addf %188, %186 : vector<16x128xf32>
    %c0_44 = arith.constant 0 : index
    %c0_45 = arith.constant 0 : index
    %c0_46 = arith.constant 0 : index
    %190 = vector.load %arg7[%c0_44, %c0_45, %c0_46] : memref<2x16x128xf32, #tpu.memory_space<vmem>>, vector<1x16x128xf32>
    %191 = vector.shape_cast %190 : vector<1x16x128xf32> to vector<16x128xf32>
    %192 = vector.shape_cast %189 : vector<16x128xf32> to vector<1x16x128xf32>
    tpu.vector_store %arg7[%c0_44, %c0_45, %c0_46], %192 {strides = array<i32>} : memref<2x16x128xf32, #tpu.memory_space<vmem>>, vector<1x16x128xf32>,
    %cst_47 = arith.constant 0.000000e+00 : f32
    %193 = vector.broadcast %cst_47 : f32 to vector<16x128xf32>
    %194 = vector.extract_strided_slice %5 {offsets = [0, 4], sizes = [16, 4], strides = [1, 1]} : vector<16x64xf32> to vector<16x4xf32>
    %195 = arith.truncf %194 : vector<16x4xf32> to vector<16x4xbf16>
    %cst_48 = arith.constant dense<0.000000e+00> : vector<16x256xf32>
    %196 = tpu.matmul %195, %6, %cst_48 {dimension_numbers = #tpu.dot_dimension_numbers<[1], [0], [0], [1], [0, 0, 1, 1], [], []>} : vector<16x4xbf16>, vector<4x256xbf16>, vector<16x256xf32> -> vector<16x256xf32>
    %197 = arith.addf %196, %9 : vector<16x256xf32>
    %198 = vector.extract_strided_slice %197 {offsets = [0, 0], sizes = [16, 128], strides = [1, 1]} : vector<16x256xf32> to vector<16x128xf32>
    %199 = arith.negf %198 : vector<16x128xf32>
    %200 = math.exp %199 : vector<16x128xf32>
    %cst_49 = arith.constant 1.000000e+00 : f32
    %201 = vector.broadcast %cst_49 : f32 to vector<16x128xf32>
    %202 = arith.addf %201, %200 : vector<16x128xf32>
    %203 = arith.divf %201, %202 : vector<16x128xf32>
    %204 = vector.extract_strided_slice %197 {offsets = [0, 128], sizes = [16, 128], strides = [1, 1]} : vector<16x256xf32> to vector<16x128xf32>
    %205 = math.tanh %204 : vector<16x128xf32>
    %cst_50 = arith.constant 1.000000e+00 : f32
    %206 = vector.broadcast %cst_50 : f32 to vector<16x128xf32>
    %207 = arith.subf %206, %203 : vector<16x128xf32>
    %208 = arith.mulf %207, %205 : vector<16x128xf32>
    %c8_i32_51 = arith.constant 8 : i32
    %209 = arith.muli %arg1, %c8_i32_51 : i32
    %c0_i32_52 = arith.constant 0 : i32
    %210 = arith.addi %209, %c0_i32_52 : i32
    %211 = arith.index_cast %210 : i32 to index
    %212 = memref.load %arg2[%211] : memref<8xf32, #tpu.memory_space<smem>>
    %213 = vector.broadcast %212 : f32 to vector<16x128xf32>
    %214 = arith.mulf %213, %208 : vector<16x128xf32>
    %215 = arith.addf %193, %214 : vector<16x128xf32>
    %216 = vector.extract_strided_slice %5 {offsets = [0, 12], sizes = [16, 4], strides = [1, 1]} : vector<16x64xf32> to vector<16x4xf32>
    %217 = arith.truncf %216 : vector<16x4xf32> to vector<16x4xbf16>
    %cst_53 = arith.constant dense<0.000000e+00> : vector<16x256xf32>
    %218 = tpu.matmul %217, %6, %cst_53 {dimension_numbers = #tpu.dot_dimension_numbers<[1], [0], [0], [1], [0, 0, 1, 1], [], []>} : vector<16x4xbf16>, vector<4x256xbf16>, vector<16x256xf32> -> vector<16x256xf32>
    %219 = arith.addf %218, %9 : vector<16x256xf32>
    %220 = vector.extract_strided_slice %219 {offsets = [0, 0], sizes = [16, 128], strides = [1, 1]} : vector<16x256xf32> to vector<16x128xf32>
    %221 = arith.negf %220 : vector<16x128xf32>
    %222 = math.exp %221 : vector<16x128xf32>
    %cst_54 = arith.constant 1.000000e+00 : f32
    %223 = vector.broadcast %cst_54 : f32 to vector<16x128xf32>
    %224 = arith.addf %223, %222 : vector<16x128xf32>
    %225 = arith.divf %223, %224 : vector<16x128xf32>
    %226 = vector.extract_strided_slice %219 {offsets = [0, 128], sizes = [16, 128], strides = [1, 1]} : vector<16x256xf32> to vector<16x128xf32>
    %227 = math.tanh %226 : vector<16x128xf32>
    %cst_55 = arith.constant 1.000000e+00 : f32
    %228 = vector.broadcast %cst_55 : f32 to vector<16x128xf32>
    %229 = arith.subf %228, %225 : vector<16x128xf32>
    %230 = arith.mulf %229, %227 : vector<16x128xf32>
    %c8_i32_56 = arith.constant 8 : i32
    %231 = arith.muli %arg1, %c8_i32_56 : i32
    %c1_i32_57 = arith.constant 1 : i32
    %232 = arith.addi %231, %c1_i32_57 : i32
    %233 = arith.index_cast %232 : i32 to index
    %234 = memref.load %arg2[%233] : memref<8xf32, #tpu.memory_space<smem>>
    %235 = vector.broadcast %234 : f32 to vector<16x128xf32>
    %236 = arith.mulf %235, %230 : vector<16x128xf32>
    %237 = arith.addf %215, %236 : vector<16x128xf32>
    %238 = vector.extract_strided_slice %5 {offsets = [0, 20], sizes = [16, 4], strides = [1, 1]} : vector<16x64xf32> to vector<16x4xf32>
    %239 = arith.truncf %238 : vector<16x4xf32> to vector<16x4xbf16>
    %cst_58 = arith.constant dense<0.000000e+00> : vector<16x256xf32>
    %240 = tpu.matmul %239, %6, %cst_58 {dimension_numbers = #tpu.dot_dimension_numbers<[1], [0], [0], [1], [0, 0, 1, 1], [], []>} : vector<16x4xbf16>, vector<4x256xbf16>, vector<16x256xf32> -> vector<16x256xf32>
    %241 = arith.addf %240, %9 : vector<16x256xf32>
    %242 = vector.extract_strided_slice %241 {offsets = [0, 0], sizes = [16, 128], strides = [1, 1]} : vector<16x256xf32> to vector<16x128xf32>
    %243 = arith.negf %242 : vector<16x128xf32>
    %244 = math.exp %243 : vector<16x128xf32>
    %cst_59 = arith.constant 1.000000e+00 : f32
    %245 = vector.broadcast %cst_59 : f32 to vector<16x128xf32>
    %246 = arith.addf %245, %244 : vector<16x128xf32>
    %247 = arith.divf %245, %246 : vector<16x128xf32>
    %248 = vector.extract_strided_slice %241 {offsets = [0, 128], sizes = [16, 128], strides = [1, 1]} : vector<16x256xf32> to vector<16x128xf32>
    %249 = math.tanh %248 : vector<16x128xf32>
    %cst_60 = arith.constant 1.000000e+00 : f32
    %250 = vector.broadcast %cst_60 : f32 to vector<16x128xf32>
    %251 = arith.subf %250, %247 : vector<16x128xf32>
    %252 = arith.mulf %251, %249 : vector<16x128xf32>
    %c8_i32_61 = arith.constant 8 : i32
    %253 = arith.muli %arg1, %c8_i32_61 : i32
    %c2_i32_62 = arith.constant 2 : i32
    %254 = arith.addi %253, %c2_i32_62 : i32
    %255 = arith.index_cast %254 : i32 to index
    %256 = memref.load %arg2[%255] : memref<8xf32, #tpu.memory_space<smem>>
    %257 = vector.broadcast %256 : f32 to vector<16x128xf32>
    %258 = arith.mulf %257, %252 : vector<16x128xf32>
    %259 = arith.addf %237, %258 : vector<16x128xf32>
    %260 = vector.extract_strided_slice %5 {offsets = [0, 28], sizes = [16, 4], strides = [1, 1]} : vector<16x64xf32> to vector<16x4xf32>
    %261 = arith.truncf %260 : vector<16x4xf32> to vector<16x4xbf16>
    %cst_63 = arith.constant dense<0.000000e+00> : vector<16x256xf32>
    %262 = tpu.matmul %261, %6, %cst_63 {dimension_numbers = #tpu.dot_dimension_numbers<[1], [0], [0], [1], [0, 0, 1, 1], [], []>} : vector<16x4xbf16>, vector<4x256xbf16>, vector<16x256xf32> -> vector<16x256xf32>
    %263 = arith.addf %262, %9 : vector<16x256xf32>
    %264 = vector.extract_strided_slice %263 {offsets = [0, 0], sizes = [16, 128], strides = [1, 1]} : vector<16x256xf32> to vector<16x128xf32>
    %265 = arith.negf %264 : vector<16x128xf32>
    %266 = math.exp %265 : vector<16x128xf32>
    %cst_64 = arith.constant 1.000000e+00 : f32
    %267 = vector.broadcast %cst_64 : f32 to vector<16x128xf32>
    %268 = arith.addf %267, %266 : vector<16x128xf32>
    %269 = arith.divf %267, %268 : vector<16x128xf32>
    %270 = vector.extract_strided_slice %263 {offsets = [0, 128], sizes = [16, 128], strides = [1, 1]} : vector<16x256xf32> to vector<16x128xf32>
    %271 = math.tanh %270 : vector<16x128xf32>
    %cst_65 = arith.constant 1.000000e+00 : f32
    %272 = vector.broadcast %cst_65 : f32 to vector<16x128xf32>
    %273 = arith.subf %272, %269 : vector<16x128xf32>
    %274 = arith.mulf %273, %271 : vector<16x128xf32>
    %c8_i32_66 = arith.constant 8 : i32
    %275 = arith.muli %arg1, %c8_i32_66 : i32
    %c3_i32_67 = arith.constant 3 : i32
    %276 = arith.addi %275, %c3_i32_67 : i32
    %277 = arith.index_cast %276 : i32 to index
    %278 = memref.load %arg2[%277] : memref<8xf32, #tpu.memory_space<smem>>
    %279 = vector.broadcast %278 : f32 to vector<16x128xf32>
    %280 = arith.mulf %279, %274 : vector<16x128xf32>
    %281 = arith.addf %259, %280 : vector<16x128xf32>
    %282 = vector.extract_strided_slice %5 {offsets = [0, 36], sizes = [16, 4], strides = [1, 1]} : vector<16x64xf32> to vector<16x4xf32>
    %283 = arith.truncf %282 : vector<16x4xf32> to vector<16x4xbf16>
    %cst_68 = arith.constant dense<0.000000e+00> : vector<16x256xf32>
    %284 = tpu.matmul %283, %6, %cst_68 {dimension_numbers = #tpu.dot_dimension_numbers<[1], [0], [0], [1], [0, 0, 1, 1], [], []>} : vector<16x4xbf16>, vector<4x256xbf16>, vector<16x256xf32> -> vector<16x256xf32>
    %285 = arith.addf %284, %9 : vector<16x256xf32>
    %286 = vector.extract_strided_slice %285 {offsets = [0, 0], sizes = [16, 128], strides = [1, 1]} : vector<16x256xf32> to vector<16x128xf32>
    %287 = arith.negf %286 : vector<16x128xf32>
    %288 = math.exp %287 : vector<16x128xf32>
    %cst_69 = arith.constant 1.000000e+00 : f32
    %289 = vector.broadcast %cst_69 : f32 to vector<16x128xf32>
    %290 = arith.addf %289, %288 : vector<16x128xf32>
    %291 = arith.divf %289, %290 : vector<16x128xf32>
    %292 = vector.extract_strided_slice %285 {offsets = [0, 128], sizes = [16, 128], strides = [1, 1]} : vector<16x256xf32> to vector<16x128xf32>
    %293 = math.tanh %292 : vector<16x128xf32>
    %cst_70 = arith.constant 1.000000e+00 : f32
    %294 = vector.broadcast %cst_70 : f32 to vector<16x128xf32>
    %295 = arith.subf %294, %291 : vector<16x128xf32>
    %296 = arith.mulf %295, %293 : vector<16x128xf32>
    %c8_i32_71 = arith.constant 8 : i32
    %297 = arith.muli %arg1, %c8_i32_71 : i32
    %c4_i32_72 = arith.constant 4 : i32
    %298 = arith.addi %297, %c4_i32_72 : i32
    %299 = arith.index_cast %298 : i32 to index
    %300 = memref.load %arg2[%299] : memref<8xf32, #tpu.memory_space<smem>>
    %301 = vector.broadcast %300 : f32 to vector<16x128xf32>
    %302 = arith.mulf %301, %296 : vector<16x128xf32>
    %303 = arith.addf %281, %302 : vector<16x128xf32>
    %304 = vector.extract_strided_slice %5 {offsets = [0, 44], sizes = [16, 4], strides = [1, 1]} : vector<16x64xf32> to vector<16x4xf32>
    %305 = arith.truncf %304 : vector<16x4xf32> to vector<16x4xbf16>
    %cst_73 = arith.constant dense<0.000000e+00> : vector<16x256xf32>
    %306 = tpu.matmul %305, %6, %cst_73 {dimension_numbers = #tpu.dot_dimension_numbers<[1], [0], [0], [1], [0, 0, 1, 1], [], []>} : vector<16x4xbf16>, vector<4x256xbf16>, vector<16x256xf32> -> vector<16x256xf32>
    %307 = arith.addf %306, %9 : vector<16x256xf32>
    %308 = vector.extract_strided_slice %307 {offsets = [0, 0], sizes = [16, 128], strides = [1, 1]} : vector<16x256xf32> to vector<16x128xf32>
    %309 = arith.negf %308 : vector<16x128xf32>
    %310 = math.exp %309 : vector<16x128xf32>
    %cst_74 = arith.constant 1.000000e+00 : f32
    %311 = vector.broadcast %cst_74 : f32 to vector<16x128xf32>
    %312 = arith.addf %311, %310 : vector<16x128xf32>
    %313 = arith.divf %311, %312 : vector<16x128xf32>
    %314 = vector.extract_strided_slice %307 {offsets = [0, 128], sizes = [16, 128], strides = [1, 1]} : vector<16x256xf32> to vector<16x128xf32>
    %315 = math.tanh %314 : vector<16x128xf32>
    %cst_75 = arith.constant 1.000000e+00 : f32
    %316 = vector.broadcast %cst_75 : f32 to vector<16x128xf32>
    %317 = arith.subf %316, %313 : vector<16x128xf32>
    %318 = arith.mulf %317, %315 : vector<16x128xf32>
    %c8_i32_76 = arith.constant 8 : i32
    %319 = arith.muli %arg1, %c8_i32_76 : i32
    %c5_i32_77 = arith.constant 5 : i32
    %320 = arith.addi %319, %c5_i32_77 : i32
    %321 = arith.index_cast %320 : i32 to index
    %322 = memref.load %arg2[%321] : memref<8xf32, #tpu.memory_space<smem>>
    %323 = vector.broadcast %322 : f32 to vector<16x128xf32>
    %324 = arith.mulf %323, %318 : vector<16x128xf32>
    %325 = arith.addf %303, %324 : vector<16x128xf32>
    %326 = vector.extract_strided_slice %5 {offsets = [0, 52], sizes = [16, 4], strides = [1, 1]} : vector<16x64xf32> to vector<16x4xf32>
    %327 = arith.truncf %326 : vector<16x4xf32> to vector<16x4xbf16>
    %cst_78 = arith.constant dense<0.000000e+00> : vector<16x256xf32>
    %328 = tpu.matmul %327, %6, %cst_78 {dimension_numbers = #tpu.dot_dimension_numbers<[1], [0], [0], [1], [0, 0, 1, 1], [], []>} : vector<16x4xbf16>, vector<4x256xbf16>, vector<16x256xf32> -> vector<16x256xf32>
    %329 = arith.addf %328, %9 : vector<16x256xf32>
    %330 = vector.extract_strided_slice %329 {offsets = [0, 0], sizes = [16, 128], strides = [1, 1]} : vector<16x256xf32> to vector<16x128xf32>
    %331 = arith.negf %330 : vector<16x128xf32>
    %332 = math.exp %331 : vector<16x128xf32>
    %cst_79 = arith.constant 1.000000e+00 : f32
    %333 = vector.broadcast %cst_79 : f32 to vector<16x128xf32>
    %334 = arith.addf %333, %332 : vector<16x128xf32>
    %335 = arith.divf %333, %334 : vector<16x128xf32>
    %336 = vector.extract_strided_slice %329 {offsets = [0, 128], sizes = [16, 128], strides = [1, 1]} : vector<16x256xf32> to vector<16x128xf32>
    %337 = math.tanh %336 : vector<16x128xf32>
    %cst_80 = arith.constant 1.000000e+00 : f32
    %338 = vector.broadcast %cst_80 : f32 to vector<16x128xf32>
    %339 = arith.subf %338, %335 : vector<16x128xf32>
    %340 = arith.mulf %339, %337 : vector<16x128xf32>
    %c8_i32_81 = arith.constant 8 : i32
    %341 = arith.muli %arg1, %c8_i32_81 : i32
    %c6_i32_82 = arith.constant 6 : i32
    %342 = arith.addi %341, %c6_i32_82 : i32
    %343 = arith.index_cast %342 : i32 to index
    %344 = memref.load %arg2[%343] : memref<8xf32, #tpu.memory_space<smem>>
    %345 = vector.broadcast %344 : f32 to vector<16x128xf32>
    %346 = arith.mulf %345, %340 : vector<16x128xf32>
    %347 = arith.addf %325, %346 : vector<16x128xf32>
    %348 = vector.extract_strided_slice %5 {offsets = [0, 60], sizes = [16, 4], strides = [1, 1]} : vector<16x64xf32> to vector<16x4xf32>
    %349 = arith.truncf %348 : vector<16x4xf32> to vector<16x4xbf16>
    %cst_83 = arith.constant dense<0.000000e+00> : vector<16x256xf32>
    %350 = tpu.matmul %349, %6, %cst_83 {dimension_numbers = #tpu.dot_dimension_numbers<[1], [0], [0], [1], [0, 0, 1, 1], [], []>} : vector<16x4xbf16>, vector<4x256xbf16>, vector<16x256xf32> -> vector<16x256xf32>
    %351 = arith.addf %350, %9 : vector<16x256xf32>
    %352 = vector.extract_strided_slice %351 {offsets = [0, 0], sizes = [16, 128], strides = [1, 1]} : vector<16x256xf32> to vector<16x128xf32>
    %353 = arith.negf %352 : vector<16x128xf32>
    %354 = math.exp %353 : vector<16x128xf32>
    %cst_84 = arith.constant 1.000000e+00 : f32
    %355 = vector.broadcast %cst_84 : f32 to vector<16x128xf32>
    %356 = arith.addf %355, %354 : vector<16x128xf32>
    %357 = arith.divf %355, %356 : vector<16x128xf32>
    %358 = vector.extract_strided_slice %351 {offsets = [0, 128], sizes = [16, 128], strides = [1, 1]} : vector<16x256xf32> to vector<16x128xf32>
    %359 = math.tanh %358 : vector<16x128xf32>
    %cst_85 = arith.constant 1.000000e+00 : f32
    %360 = vector.broadcast %cst_85 : f32 to vector<16x128xf32>
    %361 = arith.subf %360, %357 : vector<16x128xf32>
    %362 = arith.mulf %361, %359 : vector<16x128xf32>
    %c8_i32_86 = arith.constant 8 : i32
    %363 = arith.muli %arg1, %c8_i32_86 : i32
    %c7_i32_87 = arith.constant 7 : i32
    %364 = arith.addi %363, %c7_i32_87 : i32
    %365 = arith.index_cast %364 : i32 to index
    %366 = memref.load %arg2[%365] : memref<8xf32, #tpu.memory_space<smem>>
    %367 = vector.broadcast %366 : f32 to vector<16x128xf32>
    %368 = arith.mulf %367, %362 : vector<16x128xf32>
    %369 = arith.addf %347, %368 : vector<16x128xf32>
    %c1 = arith.constant 1 : index
    %c0_88 = arith.constant 0 : index
    %c0_89 = arith.constant 0 : index
    %370 = vector.load %arg7[%c1, %c0_88, %c0_89] : memref<2x16x128xf32, #tpu.memory_space<vmem>>, vector<1x16x128xf32>
    %371 = vector.shape_cast %370 : vector<1x16x128xf32> to vector<16x128xf32>
    %372 = arith.addf %371, %369 : vector<16x128xf32>
    %c1_90 = arith.constant 1 : index
    %c0_91 = arith.constant 0 : index
    %c0_92 = arith.constant 0 : index
    %373 = vector.load %arg7[%c1_90, %c0_91, %c0_92] : memref<2x16x128xf32, #tpu.memory_space<vmem>>, vector<1x16x128xf32>
    %374 = vector.shape_cast %373 : vector<1x16x128xf32> to vector<16x128xf32>
    %375 = vector.shape_cast %372 : vector<16x128xf32> to vector<1x16x128xf32>
    tpu.vector_store %arg7[%c1_90, %c0_91, %c0_92], %375 {strides = array<i32>} : memref<2x16x128xf32, #tpu.memory_space<vmem>>, vector<1x16x128xf32>,
    return
  }
  func.func @transform_0(%arg0: i32, %arg1: i32) -> i32 {
    %c0_i32 = arith.constant 0 : i32
    %c0_i32_0 = arith.constant 0 : i32
    return %c0_i32 : i32
  }
  func.func @transform_1(%arg0: i32, %arg1: i32) -> (i32, i32) {
    %c0_i32 = arith.constant 0 : i32
    %c0_i32_0 = arith.constant 0 : i32
    return %c0_i32, %arg1 : i32, i32
  }
  func.func @transform_2(%arg0: i32, %arg1: i32) -> (i32, i32) {
    %c0_i32 = arith.constant 0 : i32
    %c0_i32_0 = arith.constant 0 : i32
    return %arg0, %c0_i32 : i32, i32
  }
  func.func @transform_3(%arg0: i32, %arg1: i32) -> (i32, i32) {
    %c0_i32 = arith.constant 0 : i32
    %c0_i32_0 = arith.constant 0 : i32
    %c0_i32_1 = arith.constant 0 : i32
    return %c0_i32, %c0_i32_0 : i32, i32
  }
  func.func @transform_4(%arg0: i32, %arg1: i32) -> (i32, i32) {
    %c0_i32 = arith.constant 0 : i32
    %c0_i32_0 = arith.constant 0 : i32
    %c0_i32_1 = arith.constant 0 : i32
    return %c0_i32, %c0_i32_0 : i32, i32
  }
  func.func @transform_5(%arg0: i32, %arg1: i32) -> (i32, i32, i32) {
    %c0_i32 = arith.constant 0 : i32
    %c0_i32_0 = arith.constant 0 : i32
    %c0_i32_1 = arith.constant 0 : i32
    return %c0_i32, %arg0, %c0_i32_0 : i32, i32, i32
  }
}

</mosaic_0001>

<bundles_post_ra>
// kernel: tpu_custom_call.1
= control target key start
LH: loop header
LB: loop body
LE: loop exit
PB: predicated region body
PF: predicated region fallthrough
CT: control target
= control target key end

     0   :  { %10 = vsyncpa [#allocation5], 0  ;;  %s2215_s0 = inlined_call_operand.hbm [shape: f32[8], index: 0, kind: input, shape index: {}]   ;;  %s2216_s1 = inlined_call_operand.hbm [shape: bf16[16,64], index: 1, kind: input, shape index: {}]   ;;  %s2217_s2 = inlined_call_operand.hbm [shape: bf16[16,16], index: 2, kind: input, shape index: {}]   ;;  %s2218_s3 = inlined_call_operand.vmem [shape: bf16[4,256], index: 3, kind: input, shape index: {}]   ;;  %s2219_s4 = inlined_call_operand.vmem [shape: f32[1,256], index: 4, kind: input, shape index: {}]   ;;  %s2220_s5 = inlined_call_operand.hbm [shape: f32[2,16,128], index: 5, kind: output, shape index: {}]  }
   0x1   :  { %11 = vsyncpa [#allocation3], 0 }
   0x2   :  { %12 = vsyncpa [#allocation8], 0 }
   0x3   :  { %13 = vsyncpa [#allocation4], 0  ;;  %s1661_s20 = scalar_lea.hbm %s2215_s0, 16 }
   0x4   :  { %p1662_p0 = scmp.ne.s32.totalorder %s2215_s0, %s1661_s20  ;;  %p1665_p1 = scmp.lt.u32.totalorder %s1661_s20, %s2215_s0 }
   0x6   :  { %p1667_p2 = pnand %p1665_p1, %p1662_p0 }
   0x8   :  { %1670 = shalt.err (!%p1667_p2)
}
   0x9   :  { %s1745_s25 = smov [#allocation2]   ;;  %s1746_s28 = smov [#allocation6]  }
   0xa   :  { %21 = dma.hbm_to_smem %s2215_s0, 16, %s1745_s25, [#allocation5]  }
   0xb   :  { %s27_s29 = sshll.u32 %s1746_s28, 4  ;;  %s1671_s7 = scalar_lea.hbm %s2216_s1, 128  ;;  %s28_s29 = int_to_ptr.vmem [resolvable:$true] %s27_s29 }
   0xc   :  { %p1672_p3 = scmp.ne.s32.totalorder %s2216_s1, %s1671_s7  ;;  %p1675_p4 = scmp.lt.u32.totalorder %s1671_s7, %s2216_s1 }
   0xe   :  { %p1677_p5 = pnand %p1675_p4, %p1672_p3 }
  0x10   :  { %1680 = shalt.err (!%p1677_p5)
}
  0x11   :  { %s1681_s12 = scalar_lea.vmem %s28_s29, 128  ;;  %p1686_p7 = scmp.lt.s32.totalorder %s28_s29, %s28_s29 }
  0x12   :  { %p1682_p6 = scmp.ne.s32.totalorder %s28_s29, %s1681_s12  ;;  %p1687_p8 = scmp.lt.s32.totalorder %s1681_s12, %s1681_s12 }
  0x14   :  { %p1688_p9 = por %p1687_p8, %p1686_p7 }
  0x16   :  { %p1689_p10 = pnand %p1688_p9, %p1682_p6 }
  0x18   :  { %1692 = shalt.err (!%p1689_p10)
}
  0x19   :  { %s1747_s0 = smov 64   ;;  %s1748_s13 = smov 4  }
  0x1a   :  { %33 = dma.hbm_to_vmem [thread:$0]  %s2216_s1, 128, %s28_s29, [#allocation3], %s1747_s0, %s1747_s0, %s1748_s13  }
  0x1b   :  { %s1749_s16 = smov [#allocation7]   ;;  %s1693_s20 = scalar_lea.hbm %s2217_s2, 128 }
  0x1c   :  { %s39_s17 = sshll.u32 %s1749_s16, 4  ;;  %p1694_p11 = scmp.ne.s32.totalorder %s2217_s2, %s1693_s20  ;;  %s40_s17 = int_to_ptr.vmem [resolvable:$true] %s39_s17 }
  0x1d   :  { %p1697_p12 = scmp.lt.u32.totalorder %s1693_s20, %s2217_s2 }
  0x1f   :  { %p1699_p13 = pnand %p1697_p12, %p1694_p11 }
  0x21   :  { %1702 = shalt.err (!%p1699_p13)
}
  0x22   :  { %s1703_s25 = scalar_lea.vmem %s40_s17, 128  ;;  %p1708_p1 = scmp.lt.s32.totalorder %s40_s17, %s40_s17 }
  0x23   :  { %p1704_p0 = scmp.ne.s32.totalorder %s40_s17, %s1703_s25  ;;  %p1709_p2 = scmp.lt.s32.totalorder %s1703_s25, %s1703_s25 }
  0x25   :  { %p1710_p3 = por %p1709_p2, %p1708_p1 }
  0x27   :  { %p1711_p4 = pnand %p1710_p3, %p1704_p0 }
  0x29   :  { %1714 = shalt.err (!%p1711_p4)
}
  0x2a   :  { %45 = dma.hbm_to_vmem [thread:$0]  %s2217_s2, 128, %s40_s17, [#allocation8], %s1747_s0, %s1747_s0, %s1748_s13  }
  0x2b   :  { %1737 = dma.done.wait [#allocation5], 16  }
  0x2c   :  { %1738 = vsyncadd [#allocation5], 4294967280 }
  0x2d   :  { %1739 = dma.done.wait [#allocation3], 128  }
  0x2e   :  { %1740 = vsyncadd [#allocation3], 4294967168 }
  0x2f   :  { %1741 = dma.done.wait [#allocation8], 128  }
  0x30   :  { %1742 = vsyncadd [#allocation8], 4294967168 }
  0x31   :  { %59 = sfence }
  0x32   :  { %v1467_v0 = vld [vmem:[#allocation6] sm:$0xff]   ;;  %v1750_v1 = vmov 0.0   ;;  %v1468_v2 = vld [vmem:[#allocation7] sm:$0xff]   ;;  %vm1751_vm0 = vmmov 0   ;;  %vm84_vm1 = vcmask 130048   ;;  %vm156_vm2 = vcmask 1041408  }
  0x33   :  { %1435 = vmatprep.subr.bf16.mxu0 %v1750_v1  ;;  %1437 = vmatprep.mubr.msk.bf16.mxu0 %vm1751_vm0, %v1750_v1  ;;  %v1354_v3 = vld.sshfl [vmem:[%s2218_s3] sm:$0x33 pattern:$0x76325410]  ;;  %v1752_v6 = vmov 0   ;;  %vm152_vm3 = vcmask 31744   ;;  %v132_v27 = vlaneseq }
  0x34   :  { %1436 = vmatpush3.bf16.msra.mxu0 %v1467_v0  ;;  %v1840_v4 = vcombine.high %v1354_v3, %v1354_v3  ;;  %v1845_v5 = vsel %vm156_vm2, %v1354_v3, 0  ;;  %195 = vmatprep.mubr.bf16.mxu1 %v1752_v6  ;;  %s1753_s2 = smov 104   ;;  %s1754_s3 = smov 120   ;;  %v130_v30 = vld [vmem:[%s2219_s4] sm:$0x3] }
  0x35   :  { %s1755_s29 = smov 96   ;;  %s1756_s30 = smov 112   ;;  %v133_v28 = vshrl.u32 %v132_v27, 7 }
  0x36   :  { %1355 = vmatprep.subr.msk.bf16.mxu1 %vm156_vm2, %v1840_v4  ;;  %1359 = vmatprep.subr.msk.bf16.mxu0 %vm156_vm2, %v1840_v4  ;;  %s1757_s6 = smov 80   ;;  %s1758_s7 = smov 88  }
  0x37   :  { %1438 = vmatmul.mubr.msk.bf16.vlgmr.msra.gmra.mrb[0].mxu0 %vm84_vm1, %v1468_v2  ;;  %164 = vmatpush1.bf16.msra.mxu1 %v1845_v5  ;;  %s1759_s8 = smov 124   ;;  %s1760_s9 = smov 72   ;;  %v134_v29 = vsub.s32 0, %v133_v28  ;;  %v138_v40 = vsub.s32 1, %v133_v28 }
  0x38   :  { %238 = vmatpush1.bf16.msra.mxu0 %v1845_v5  ;;  %1364 = vmatprep.subr.msk.bf16.mxu1 %vm156_vm2, %v1840_v4  ;;  %s1761_s10 = smov 108   ;;  %s1762_s11 = smov 116  }
  0x39   :  { %1369 = vmatprep.subr.msk.bf16.mxu0 %vm156_vm2, %v1840_v4  ;;  %269 = vmatprep.mubr.bf16.mxu0 %v1752_v6  ;;  %s1763_s12 = smov 92   ;;  %s1764_s0 = smov 100   ;;  %v1928_v31 = vrot.slane %v130_v30, %v134_v29  ;;  %v1932_v41 = vrot.slane %v130_v30, %v138_v40 }
  0x3a   :  { %s1765_s13 = smov 76   ;;  %s1766_s14 = smov 84  }
  0x3b   :  { %s1767_s15 = smov 68   ;;  %s1962_s4 = sld [smem:[#allocation2]] }
  0x3c   :  { %s1969_s18 = sld [smem:[#allocation2 + $0x1]]  ;;  %s1976_s19 = sld [smem:[#allocation2 + $0x2]] }
  0x3d   :  { %s1999_s20 = sld [smem:[#allocation2 + $0x3]]  ;;  %s2013_s21 = sld [smem:[#allocation2 + $0x4]] }
  0x3e   :  { %s2048_s22 = sld [smem:[#allocation2 + $0x5]]  ;;  %s2085_s23 = sld [smem:[#allocation2 + $0x6]] }
  0x3f   :  { %s2127_s24 = sld [smem:[#allocation2 + $0x7]]  ;;  %s1768_s25 = smov [#allocation9]  }
  0x40   :  { %s1337_s1 = sshll.u32 %s1768_s25, 4  ;;  %s1338_s1 = int_to_ptr.vmem [resolvable:$true] %s1337_s1 }
  0x41   :  { %s1715_s26 = scalar_lea.vmem %s1338_s1, 512  ;;  %p1720_p6 = scmp.lt.s32.totalorder %s1338_s1, %s1338_s1 }
  0x42   :  { %p1716_p5 = scmp.ne.s32.totalorder %s1338_s1, %s1715_s26  ;;  %p1721_p7 = scmp.lt.s32.totalorder %s1715_s26, %s1715_s26 }
  0x44   :  { %p1722_p8 = por %p1721_p7, %p1720_p6 }
  0x46   :  { %p1723_p9 = pnand %p1722_p8, %p1716_p5 }
 0x10a   :  { %v122_v7 = vpop.f32.mrb[0].mxu0 }
 0x10b   :  { %v1439_v8 = vpop.f32.mrb[1].mxu0 }
 0x10c   :  { %v125_v9 = vpop.f32.mrb[2].mxu0 }
 0x10d   :  { %v142_v10 = vpack.c.bf16 %v125_v9, %v122_v7  ;;  %v1440_v11 = vpop.f32.mrb[3].mxu0 }
 0x10f   :  { %378 = vrot.lane.b32.xlu1 %v142_v10, %s1753_s2  ;;  %232 = vrot.lane.b32.xlu0 %v142_v10, %s1754_s3 }
 0x110   :  { %1356 = vmatmul.mubr.msk.bf16.vlgmr.msra.gmra.mrb[0].mxu1 %vm152_vm3, %v142_v10 }
 0x111   :  { %311 = vmatpush1.bf16.msra.mxu1 %v1845_v5  ;;  %342 = vmatprep.mubr.bf16.mxu1 %v1752_v6 }
 0x112   :  { %1374 = vmatprep.subr.msk.bf16.mxu1 %vm156_vm2, %v1840_v4 }
 0x113   :  { %451 = vrot.lane.b32.xlu1 %v142_v10, %s1755_s29  ;;  %305 = vrot.lane.b32.xlu0 %v142_v10, %s1756_s30 }
 0x117   :  { %597 = vrot.lane.b32.xlu1 %v142_v10, %s1757_s6  ;;  %524 = vrot.lane.b32.xlu0 %v142_v10, %s1758_s7 }
 0x11b   :  { %749 = vrot.lane.b32.xlu1 %v142_v10, %s1759_s8  ;;  %670 = vrot.lane.b32.xlu0 %v142_v10, %s1760_s9 }
 0x11f   :  { %893 = vrot.lane.b32.xlu1 %v142_v10, %s1761_s10  ;;  %821 = vrot.lane.b32.xlu0 %v142_v10, %s1762_s11 }
 0x123   :  { %1037 = vrot.lane.b32.xlu1 %v142_v10, %s1763_s12  ;;  %965 = vrot.lane.b32.xlu0 %v142_v10, %s1764_s0 }
 0x127   :  { %1181 = vrot.lane.b32.xlu1 %v142_v10, %s1765_s13  ;;  %1109 = vrot.lane.b32.xlu0 %v142_v10, %s1766_s14 }
 0x12b   :  { %1253 = vrot.lane.b32.xlu0 %v142_v10, %s1767_s15 }
 0x181   :  { %v233_v12 = vpop.permute.xlu0 %232  ;;  %v379_v14 = vpop.permute.xlu1 %378 }
 0x182   :  { %1360 = vmatmul.mubr.msk.bf16.vlgmr.msra.gmra.mrb[4].mxu0 %vm152_vm3, %v233_v12 }
 0x183   :  { %384 = vmatpush1.bf16.msra.mxu0 %v1845_v5  ;;  %415 = vmatprep.mubr.bf16.mxu0 %v1752_v6 }
 0x184   :  { %1379 = vmatprep.subr.msk.bf16.mxu0 %vm156_vm2, %v1840_v4 }
 0x185   :  { %v306_v13 = vpop.permute.xlu0 %305  ;;  %v452_v15 = vpop.permute.xlu1 %451 }
 0x186   :  { %1365 = vmatmul.mubr.msk.bf16.vlgmr.msra.gmra.mrb[4].mxu1 %vm152_vm3, %v306_v13 }
 0x187   :  { %457 = vmatpush1.bf16.msra.mxu1 %v1845_v5  ;;  %488 = vmatprep.mubr.bf16.mxu1 %v1752_v6 }
 0x188   :  { %1384 = vmatprep.subr.msk.bf16.mxu1 %vm156_vm2, %v1840_v4 }
 0x189   :  { %v525_v16 = vpop.permute.xlu0 %524  ;;  %v598_v17 = vpop.permute.xlu1 %597 }
 0x18a   :  { %1370 = vmatmul.mubr.msk.bf16.vlgmr.msra.gmra.mrb[8].mxu0 %vm152_vm3, %v379_v14 }
 0x18b   :  { %530 = vmatpush1.bf16.msra.mxu0 %v1845_v5  ;;  %561 = vmatprep.mubr.bf16.mxu0 %v1752_v6 }
 0x18c   :  { %1389 = vmatprep.subr.msk.bf16.mxu0 %vm156_vm2, %v1840_v4 }
 0x18d   :  { %v671_v18 = vpop.permute.xlu0 %670  ;;  %v750_v19 = vpop.permute.xlu1 %749 }
 0x18e   :  { %1375 = vmatmul.mubr.msk.bf16.vlgmr.msra.gmra.mrb[8].mxu1 %vm152_vm3, %v452_v15 }
 0x18f   :  { %603 = vmatpush1.bf16.msra.mxu1 %v1845_v5  ;;  %634 = vmatprep.mubr.bf16.mxu1 %v1752_v6 }
 0x190   :  { %1394 = vmatprep.subr.msk.bf16.mxu1 %vm156_vm2, %v1840_v4 }
 0x191   :  { %v822_v20 = vpop.permute.xlu0 %821  ;;  %v894_v21 = vpop.permute.xlu1 %893 }
 0x192   :  { %1380 = vmatmul.mubr.msk.bf16.vlgmr.msra.gmra.mrb[12].mxu0 %vm152_vm3, %v525_v16 }
 0x193   :  { %676 = vmatpush1.bf16.msra.mxu0 %v1845_v5  ;;  %707 = vmatprep.mubr.bf16.mxu0 %v1752_v6 }
 0x194   :  { %1398 = vmatprep.subr.msk.bf16.mxu0 %vm156_vm2, %v1840_v4 }
 0x195   :  { %v966_v22 = vpop.permute.xlu0 %965  ;;  %v1038_v23 = vpop.permute.xlu1 %1037 }
 0x196   :  { %1385 = vmatmul.mubr.msk.bf16.vlgmr.msra.gmra.mrb[12].mxu1 %vm152_vm3, %v598_v17 }
 0x197   :  { %755 = vmatpush1.bf16.msra.mxu1 %v1845_v5  ;;  %786 = vmatprep.mubr.bf16.mxu1 %v1752_v6 }
 0x198   :  { %1403 = vmatprep.subr.msk.bf16.mxu1 %vm156_vm2, %v1840_v4 }
 0x199   :  { %v1110_v24 = vpop.permute.xlu0 %1109  ;;  %v1182_v25 = vpop.permute.xlu1 %1181 }
 0x19a   :  { %1390 = vmatmul.mubr.msk.bf16.vlgmr.msra.gmra.mrb[16].mxu0 %vm152_vm3, %v671_v18 }
 0x19b   :  { %827 = vmatpush1.bf16.msra.mxu0 %v1845_v5  ;;  %858 = vmatprep.mubr.bf16.mxu0 %v1752_v6 }
 0x19c   :  { %1408 = vmatprep.subr.msk.bf16.mxu0 %vm156_vm2, %v1840_v4 }
 0x19d   :  { %v1254_v26 = vpop.permute.xlu0 %1253 }
 0x19e   :  { %1395 = vmatmul.mubr.msk.bf16.vlgmr.msra.gmra.mrb[16].mxu1 %vm152_vm3, %v750_v19 }
 0x19f   :  { %899 = vmatpush1.bf16.msra.mxu1 %v1845_v5  ;;  %930 = vmatprep.mubr.bf16.mxu1 %v1752_v6 }
 0x1a0   :  { %1413 = vmatprep.subr.msk.bf16.mxu1 %vm156_vm2, %v1840_v4 }
 0x1a2   :  { %1399 = vmatmul.mubr.msk.bf16.vlgmr.msra.gmra.mrb[20].mxu0 %vm152_vm3, %v822_v20 }
 0x1a3   :  { %971 = vmatpush1.bf16.msra.mxu0 %v1845_v5  ;;  %1002 = vmatprep.mubr.bf16.mxu0 %v1752_v6 }
 0x1a4   :  { %1418 = vmatprep.subr.msk.bf16.mxu0 %vm156_vm2, %v1840_v4 }
 0x1a6   :  { %1404 = vmatmul.mubr.msk.bf16.vlgmr.msra.gmra.mrb[20].mxu1 %vm152_vm3, %v894_v21 }
 0x1a7   :  { %1043 = vmatpush1.bf16.msra.mxu1 %v1845_v5  ;;  %1074 = vmatprep.mubr.bf16.mxu1 %v1752_v6 }
 0x1a8   :  { %1423 = vmatprep.subr.msk.bf16.mxu1 %vm156_vm2, %v1840_v4 }
 0x1aa   :  { %1409 = vmatmul.mubr.msk.bf16.vlgmr.msra.gmra.mrb[24].mxu0 %vm152_vm3, %v966_v22 }
 0x1ab   :  { %1115 = vmatpush1.bf16.msra.mxu0 %v1845_v5  ;;  %1146 = vmatprep.mubr.bf16.mxu0 %v1752_v6 }
 0x1ac   :  { %1428 = vmatprep.subr.msk.bf16.mxu0 %vm156_vm2, %v1840_v4 }
 0x1ae   :  { %1414 = vmatmul.mubr.msk.bf16.vlgmr.msra.gmra.mrb[24].mxu1 %vm152_vm3, %v1038_v23 }
 0x1af   :  { %1187 = vmatpush1.bf16.msra.mxu1 %v1845_v5  ;;  %1218 = vmatprep.mubr.bf16.mxu1 %v1752_v6 }
 0x1b2   :  { %1419 = vmatmul.mubr.msk.bf16.vlgmr.msra.gmra.mrb[28].mxu0 %vm152_vm3, %v1110_v24 }
 0x1b3   :  { %1259 = vmatpush1.bf16.msra.mxu0 %v1845_v5  ;;  %1290 = vmatprep.mubr.bf16.mxu0 %v1752_v6 }
 0x1b6   :  { %1424 = vmatmul.mubr.msk.bf16.vlgmr.msra.gmra.mrb[28].mxu1 %vm152_vm3, %v1182_v25 }
 0x1ba   :  { %1429 = vmatmul.mubr.msk.bf16.vlgmr.msra.gmra.mrb[32].mxu0 %vm152_vm3, %v1254_v26 }
 0x1e3   :  { %v197_v32 = vpop.f32.mrb[0].mxu1 }
 0x1e4   :  { %v198_v33 = vadd.f32 %v197_v32, %v1928_v31  ;;  %v199_v34 = vpop.f32.mrb[1].mxu1 }
 0x1e5   :  { %v201_v35 = vpop.f32.mrb[2].mxu1  ;;  %v200_v43 = vadd.f32 %v199_v34, %v1932_v41 }
 0x1e6   :  { %v1357_v36 = vmul.f32 -1.442695, %v198_v33  ;;  %v202_v37 = vadd.f32 %v201_v35, %v1928_v31  ;;  %v203_v38 = vpop.f32.mrb[3].mxu1 }
 0x1e7   :  { %v204_v47 = vadd.f32 %v203_v38, %v1932_v41 }
 0x1e8   :  { %1469 = vpow2.f32 %v1357_v36  ;;  %v1358_v39 = vmul.f32 -1.442695, %v202_v37 }
 0x1ea   :  { %1471 = vpow2.f32 %v1358_v39 }
 0x1f2   :  { %v1470_v42 = vpop.eup %1469 }
 0x1f3   :  { %v212_v44 = vadd.f32 1.0, %v1470_v42 }
 0x1f4   :  { %v1472_v45 = vpop.eup %1471 }
 0x1f5   :  { %1473 = vrcp.f32 %v212_v44  ;;  %v213_v46 = vadd.f32 1.0, %v1472_v45 }
 0x1f6   :  { %1475 = vtanh.f32 %v200_v43 }
 0x1f7   :  { %1477 = vrcp.f32 %v213_v46 }
 0x1f8   :  { %1479 = vtanh.f32 %v204_v47 }
 0x1ff   :  { %v1474_v48 = vpop.eup %1473 }
 0x200   :  { %v1476_v49 = vpop.eup %1475  ;;  %v220_v50 = vsub.f32 1.0, %v1474_v48 }
 0x201   :  { %v1478_v51 = vpop.eup %1477 }
 0x202   :  { %v1936_v52 = vmul.f32 %v1476_v49, %v220_v50  ;;  %v221_v53 = vsub.f32 1.0, %v1478_v51  ;;  %v1480_v54 = vpop.eup %1479 }
 0x204   :  { %v1938_v55 = vmul.f32 %v1480_v54, %v221_v53 }
 0x255   :  { %v271_v56 = vpop.f32.mrb[4].mxu0 }
 0x256   :  { %v272_v57 = vadd.f32 %v271_v56, %v1928_v31  ;;  %v273_v58 = vpop.f32.mrb[5].mxu0 }
 0x257   :  { %v275_v59 = vpop.f32.mrb[6].mxu0  ;;  %v274_v63 = vadd.f32 %v273_v58, %v1932_v41 }
 0x258   :  { %v1361_v60 = vmul.f32 -1.442695, %v272_v57  ;;  %v276_v61 = vadd.f32 %v275_v59, %v1928_v31  ;;  %v277_v62 = vpop.f32.mrb[7].mxu0 }
 0x259   :  { %v344_v0 = vpop.f32.mrb[4].mxu1  ;;  %v278_v4 = vadd.f32 %v277_v62, %v1932_v41 }
 0x25a   :  { %1481 = vpow2.f32 %v1361_v60  ;;  %v1362_v1 = vmul.f32 -1.442695, %v276_v61  ;;  %v345_v2 = vadd.f32 %v344_v0, %v1928_v31  ;;  %v346_v3 = vpop.f32.mrb[5].mxu1 }
 0x25b   :  { %v348_v5 = vpop.f32.mrb[6].mxu1  ;;  %v347_v9 = vadd.f32 %v346_v3, %v1932_v41 }
 0x25c   :  { %1483 = vpow2.f32 %v1362_v1  ;;  %v1366_v6 = vmul.f32 -1.442695, %v345_v2  ;;  %v349_v7 = vadd.f32 %v348_v5, %v1928_v31  ;;  %v350_v8 = vpop.f32.mrb[7].mxu1 }
 0x25d   :  { %1485 = vtanh.f32 %v274_v63  ;;  %v417_v10 = vpop.f32.mrb[8].mxu0  ;;  %v351_v14 = vadd.f32 %v350_v8, %v1932_v41 }
 0x25e   :  { %1487 = vpow2.f32 %v1366_v6  ;;  %v1367_v11 = vmul.f32 -1.442695, %v349_v7  ;;  %v418_v12 = vadd.f32 %v417_v10, %v1928_v31  ;;  %v419_v13 = vpop.f32.mrb[9].mxu0 }
 0x25f   :  { %1489 = vtanh.f32 %v278_v4  ;;  %v421_v15 = vpop.f32.mrb[10].mxu0  ;;  %v420_v19 = vadd.f32 %v419_v13, %v1932_v41  ;;  %v1991_v13 = vstv %s1962_s4 }
 0x260   :  { %1491 = vpow2.f32 %v1367_v11  ;;  %v1371_v16 = vmul.f32 -1.442695, %v418_v12  ;;  %v422_v17 = vadd.f32 %v421_v15, %v1928_v31  ;;  %v423_v18 = vpop.f32.mrb[11].mxu0 }
 0x261   :  { %1493 = vtanh.f32 %v347_v9  ;;  %v490_v20 = vpop.f32.mrb[8].mxu1  ;;  %v424_v33 = vadd.f32 %v423_v18, %v1932_v41  ;;  %v1997_v18 = vstv %s1969_s18 }
 0x262   :  { %1495 = vpow2.f32 %v1371_v16  ;;  %v1372_v21 = vmul.f32 -1.442695, %v422_v17  ;;  %v491_v22 = vadd.f32 %v490_v20, %v1928_v31  ;;  %v492_v23 = vpop.f32.mrb[9].mxu1 }
 0x263   :  { %1497 = vtanh.f32 %v351_v14  ;;  %v494_v24 = vpop.f32.mrb[10].mxu1  ;;  %v493_v49 = vadd.f32 %v492_v23, %v1932_v41 }
 0x264   :  { %v1482_v25 = vpop.eup %1481  ;;  %1499 = vpow2.f32 %v1372_v21  ;;  %v1376_v26 = vmul.f32 -1.442695, %v491_v22  ;;  %v495_v27 = vadd.f32 %v494_v24, %v1928_v31  ;;  %v496_v28 = vpop.f32.mrb[11].mxu1 }
 0x265   :  { %v286_v29 = vadd.f32 1.0, %v1482_v25  ;;  %1501 = vtanh.f32 %v420_v19  ;;  %v563_v30 = vpop.f32.mrb[12].mxu0  ;;  %v497_v0 = vadd.f32 %v496_v28, %v1932_v41  ;;  %v228_v28 = vmul.f32 %v1991_v13, %v1938_v55 }
 0x266   :  { %v1484_v32 = vpop.eup %1483  ;;  %1503 = vpow2.f32 %v1376_v26  ;;  %v1377_v34 = vmul.f32 -1.442695, %v495_v27  ;;  %v564_v35 = vadd.f32 %v563_v30, %v1928_v31  ;;  %v565_v36 = vpop.f32.mrb[13].mxu0  ;;  %v227_v27 = vmul.f32 %v1991_v13, %v1936_v52 }
 0x267   :  { %v1955_v37 = vpop.eup %1485  ;;  %1505 = vrcp.f32 %v286_v29  ;;  %v287_v38 = vadd.f32 1.0, %v1484_v32  ;;  %v567_v39 = vpop.f32.mrb[14].mxu0  ;;  %v566_v15 = vadd.f32 %v565_v36, %v1932_v41  ;;  %v2011_v29 = vstv %s1976_s19 }
 0x268   :  { %v1488_v40 = vpop.eup %1487  ;;  %1507 = vpow2.f32 %v1377_v34  ;;  %v1381_v42 = vmul.f32 -1.442695, %v564_v35  ;;  %v568_v43 = vadd.f32 %v567_v39, %v1928_v31  ;;  %v1958_v44 = vpop.f32.mrb[15].mxu0 }
 0x269   :  { %v1960_v45 = vpop.eup %1489  ;;  %1509 = vrcp.f32 %v287_v38  ;;  %v359_v46 = vadd.f32 1.0, %v1488_v40  ;;  %v636_v47 = vpop.f32.mrb[12].mxu1  ;;  %v570_v55 = vadd.f32 %v1958_v44, %v1932_v41 }
 0x26a   :  { %v1492_v48 = vpop.eup %1491  ;;  %1511 = vtanh.f32 %v424_v33  ;;  %v1965_v50 = vpop.f32.mrb[13].mxu1  ;;  %v1382_v57 = vmul.f32 -1.442695, %v568_v43  ;;  %v637_v58 = vadd.f32 %v636_v47, %v1928_v31 }
 0x26b   :  { %v1967_v51 = vpop.eup %1493  ;;  %1513 = vrcp.f32 %v359_v46  ;;  %v360_v53 = vadd.f32 1.0, %v1492_v48  ;;  %v640_v54 = vpop.f32.mrb[14].mxu1 }
 0x26c   :  { %v1496_v56 = vpop.eup %1495  ;;  %1515 = vpow2.f32 %v1381_v42  ;;  %v1972_v59 = vpop.f32.mrb[15].mxu1  ;;  %v641_v4 = vadd.f32 %v640_v54, %v1928_v31  ;;  %v1386_v7 = vmul.f32 -1.442695, %v637_v58 }
 0x26d   :  { %v1974_v60 = vpop.eup %1497  ;;  %1517 = vrcp.f32 %v360_v53  ;;  %v432_v61 = vadd.f32 1.0, %v1496_v56  ;;  %v709_v62 = vpop.f32.mrb[16].mxu0 }
 0x26e   :  { %v1500_v63 = vpop.eup %1499  ;;  %1519 = vtanh.f32 %v493_v49  ;;  %v1979_v1 = vpop.f32.mrb[17].mxu0  ;;  %v1387_v20 = vmul.f32 -1.442695, %v641_v4  ;;  %v710_v38 = vadd.f32 %v709_v62, %v1928_v31  ;;  %v2037_v62 = vstv %s1999_s20 }
 0x26f   :  { %v1981_v2 = vpop.eup %1501  ;;  %1521 = vrcp.f32 %v432_v61  ;;  %v433_v3 = vadd.f32 1.0, %v1500_v63  ;;  %v1984_v5 = vpop.f32.mrb[18].mxu0 }
 0x270   :  { %v1504_v6 = vpop.eup %1503  ;;  %1523 = vpow2.f32 %v1382_v57  ;;  %v1986_v8 = vpop.f32.mrb[19].mxu0  ;;  %v1391_v63 = vmul.f32 -1.442695, %v710_v38  ;;  %v643_v38 = vadd.f32 %v1972_v59, %v1932_v41 }
 0x271   :  { %v1506_v9 = vpop.eup %1505  ;;  %1525 = vrcp.f32 %v433_v3  ;;  %v505_v10 = vadd.f32 1.0, %v1504_v6  ;;  %v1988_v11 = vpop.f32.mrb[16].mxu1 }
 0x272   :  { %v1508_v12 = vpop.eup %1507  ;;  %v294_v14 = vsub.f32 1.0, %v1506_v9  ;;  %1527 = vtanh.f32 %v497_v0  ;;  %v1994_v16 = vpop.f32.mrb[17].mxu1 }
 0x273   :  { %v1510_v17 = vpop.eup %1509  ;;  %1529 = vrcp.f32 %v505_v10  ;;  %v506_v19 = vadd.f32 1.0, %v1508_v12  ;;  %v2001_v21 = vpop.f32.mrb[18].mxu1  ;;  %v2046_v12 = vstv %s2013_s21 }
 0x274   :  { %v1512_v22 = vpop.eup %1511  ;;  %v296_v23 = vmul.f32 %v1955_v37, %v294_v14  ;;  %v295_v24 = vsub.f32 1.0, %v1510_v17  ;;  %1531 = vpow2.f32 %v1386_v7  ;;  %v2004_v25 = vpop.f32.mrb[19].mxu1  ;;  %v714_v14 = vadd.f32 %v1984_v5, %v1928_v31 }
 0x275   :  { %v1514_v26 = vpop.eup %1513  ;;  %1533 = vrcp.f32 %v506_v19  ;;  %v2015_v30 = vpop.f32.mrb[20].mxu0 }
 0x276   :  { %v1516_v32 = vpop.eup %1515  ;;  %v301_v33 = vmul.f32 %v1997_v18, %v296_v23  ;;  %v297_v34 = vmul.f32 %v1960_v45, %v295_v24  ;;  %v367_v35 = vsub.f32 1.0, %v1514_v26  ;;  %1535 = vtanh.f32 %v566_v15  ;;  %v2019_v36 = vpop.f32.mrb[21].mxu0 }
 0x277   :  { %v1518_v52 = vpop.eup %1517  ;;  %v578_v37 = vadd.f32 1.0, %v1516_v32  ;;  %1537 = vpow2.f32 %v1387_v20  ;;  %v2024_v39 = vpop.f32.mrb[22].mxu0  ;;  %v789_v32 = vadd.f32 %v1988_v11, %v1928_v31  ;;  %v861_v59 = vadd.f32 %v2015_v30, %v1928_v31 }
 0x278   :  { %v1520_v40 = vpop.eup %1519  ;;  %v303_v42 = vadd.f32 %v301_v33, %v227_v27  ;;  %v302_v43 = vmul.f32 %v1997_v18, %v297_v34  ;;  %v369_v45 = vmul.f32 %v1967_v51, %v367_v35  ;;  %v368_v46 = vsub.f32 1.0, %v1518_v52  ;;  %v2028_v47 = vpop.f32.mrb[23].mxu0 }
 0x279   :  { %v1522_v48 = vpop.eup %1521  ;;  %1539 = vrcp.f32 %v578_v37  ;;  %v2030_v49 = vpop.f32.mrb[20].mxu1 }
 0x27a   :  { %v1524_v44 = vpop.eup %1523  ;;  %v304_v53 = vadd.f32 %v302_v43, %v228_v28  ;;  %v374_v54 = vmul.f32 %v2011_v29, %v369_v45  ;;  %v370_v56 = vmul.f32 %v1974_v60, %v368_v46  ;;  %v440_v57 = vsub.f32 1.0, %v1522_v48  ;;  %v2034_v58 = vpop.f32.mrb[21].mxu1 }
 0x27b   :  { %v1526_v61 = vpop.eup %1525  ;;  %v579_v51 = vadd.f32 1.0, %v1524_v44  ;;  %1541 = vtanh.f32 %v570_v55  ;;  %v2039_v0 = vpop.f32.mrb[22].mxu1  ;;  %v639_v28 = vadd.f32 %v1965_v50, %v1932_v41  ;;  %v1392_v50 = vmul.f32 -1.442695, %v714_v14 }
 0x27c   :  { %v1528_v3 = vpop.eup %1527  ;;  %v376_v4 = vadd.f32 %v374_v54, %v303_v42  ;;  %v375_v6 = vmul.f32 %v2011_v29, %v370_v56  ;;  %v442_v7 = vmul.f32 %v1981_v2, %v440_v57  ;;  %v441_v9 = vsub.f32 1.0, %v1526_v61  ;;  %v2043_v60 = vpop.f32.mrb[23].mxu1 }
 0x27d   :  { %v1530_v10 = vpop.eup %1529  ;;  %1543 = vrcp.f32 %v579_v51  ;;  %v2052_v15 = vpop.f32.mrb[24].mxu0  ;;  %v793_v42 = vadd.f32 %v2001_v21, %v1928_v31  ;;  %v1400_v14 = vmul.f32 -1.442695, %v861_v59 }
 0x27e   :  { %v1532_v17 = vpop.eup %1531  ;;  %v377_v19 = vadd.f32 %v375_v6, %v304_v53  ;;  %v447_v20 = vmul.f32 %v2037_v62, %v442_v7  ;;  %v443_v23 = vmul.f32 %v1512_v22, %v441_v9  ;;  %v513_v2 = vsub.f32 1.0, %v1530_v10  ;;  %v2055_v24 = vpop.f32.mrb[25].mxu0 }
 0x27f   :  { %v1534_v26 = vpop.eup %1533  ;;  %v651_v27 = vadd.f32 1.0, %v1532_v17  ;;  %1545 = vpow2.f32 %v1391_v63  ;;  %v2061_v5 = vpop.f32.mrb[26].mxu0  ;;  %v1396_v53 = vmul.f32 -1.442695, %v789_v32  ;;  %v2083_v63 = vstv %s2048_s22 }
 0x280   :  { %v1536_v33 = vpop.eup %1535  ;;  %v449_v34 = vadd.f32 %v447_v20, %v376_v4  ;;  %v448_v35 = vmul.f32 %v2037_v62, %v443_v23  ;;  %v515_v52 = vmul.f32 %v1520_v40, %v513_v2  ;;  %v514_v22 = vsub.f32 1.0, %v1534_v26  ;;  %v2064_v37 = vpop.f32.mrb[27].mxu0 }
 0x281   :  { %v1538_v55 = vpop.eup %1537  ;;  %1547 = vrcp.f32 %v651_v27  ;;  %v2070_v11 = vpop.f32.mrb[24].mxu1  ;;  %v865_v7 = vadd.f32 %v2024_v39, %v1928_v31  ;;  %v933_v23 = vadd.f32 %v2030_v49, %v1928_v31  ;;  %v712_v27 = vadd.f32 %v1979_v1, %v1932_v41 }
 0x282   :  { %v450_v43 = vadd.f32 %v448_v35, %v377_v19  ;;  %v520_v45 = vmul.f32 %v2046_v12, %v515_v52  ;;  %v516_v46 = vmul.f32 %v1528_v3, %v514_v22  ;;  %v652_v40 = vadd.f32 1.0, %v1538_v55  ;;  %v2073_v48 = vpop.f32.mrb[25].mxu1 }
 0x283   :  { %v1540_v44 = vpop.eup %1539  ;;  %1549 = vtanh.f32 %v639_v28  ;;  %v2077_v54 = vpop.f32.mrb[26].mxu1  ;;  %v1397_v3 = vmul.f32 -1.442695, %v793_v42  ;;  %v716_v49 = vadd.f32 %v1986_v8, %v1932_v41  ;;  %v937_v22 = vadd.f32 %v2039_v0, %v1928_v31 }
 0x284   :  { %v522_v56 = vadd.f32 %v520_v45, %v449_v34  ;;  %v521_v21 = vmul.f32 %v2046_v12, %v516_v46  ;;  %v586_v57 = vsub.f32 1.0, %v1540_v44  ;;  %1551 = vrcp.f32 %v652_v40  ;;  %v2080_v61 = vpop.f32.mrb[27].mxu1 }
 0x285   :  { %v1542_v51 = vpop.eup %1541  ;;  %1553 = vpow2.f32 %v1392_v50  ;;  %v2087_v4 = vpop.f32.mrb[28].mxu0  ;;  %v1401_v34 = vmul.f32 -1.442695, %v865_v7  ;;  %v1405_v50 = vmul.f32 -1.442695, %v933_v23  ;;  %v2116_v45 = vstv %s2085_s23 }
 0x286   :  { %v523_v6 = vadd.f32 %v521_v21, %v450_v43  ;;  %v588_v30 = vmul.f32 %v1536_v33, %v586_v57  ;;  %1555 = vtanh.f32 %v643_v38  ;;  %v2091_v9 = vpop.f32.mrb[29].mxu0  ;;  %v791_v8 = vadd.f32 %v1994_v16, %v1932_v41 }
 0x287   :  { %v1544_v10 = vpop.eup %1543  ;;  %1557 = vpow2.f32 %v1396_v53  ;;  %v2093_v17 = vpop.f32.mrb[30].mxu0  ;;  %v1406_v21 = vmul.f32 -1.442695, %v937_v22  ;;  %v1005_v57 = vadd.f32 %v2052_v15, %v1928_v31 }
 0x288   :  { %v593_v19 = vmul.f32 %v2083_v63, %v588_v30  ;;  %v587_v20 = vsub.f32 1.0, %v1544_v10  ;;  %v2098_v2 = vpop.f32.mrb[31].mxu0  ;;  %1559 = vpow2.f32 %v1397_v3 }
 0x289   :  { %v1546_v26 = vpop.eup %1545  ;;  %v2102_v39 = vpop.f32.mrb[28].mxu1  ;;  %1561 = vpow2.f32 %v1400_v14 }
 0x28a   :  { %v595_v28 = vadd.f32 %v593_v19, %v522_v56  ;;  %v589_v32 = vmul.f32 %v1542_v51, %v587_v20  ;;  %v724_v33 = vadd.f32 1.0, %v1546_v26  ;;  %v2104_v35 = vpop.f32.mrb[29].mxu1  ;;  %v1009_v26 = vadd.f32 %v2061_v5, %v1928_v31 }
 0x28b   :  { %v1548_v52 = vpop.eup %1547  ;;  %v2110_v55 = vpop.f32.mrb[30].mxu1  ;;  %v1077_v5 = vadd.f32 %v2070_v11, %v1928_v31 }
 0x28c   :  { %v594_v1 = vmul.f32 %v2083_v63, %v589_v32  ;;  %v659_v38 = vsub.f32 1.0, %v1548_v52  ;;  %1563 = vrcp.f32 %v724_v33  ;;  %v2113_v42 = vpop.f32.mrb[31].mxu1  ;;  %v1410_v32 = vmul.f32 -1.442695, %v1005_v57 }
 0x28d   :  { %v1550_v43 = vpop.eup %1549  ;;  %1565 = vtanh.f32 %v712_v27  ;;  %v2120_v46 = vpop.f32.mrb[32].mxu0  ;;  %v1415_v11 = vmul.f32 -1.442695, %v1077_v5 }
 0x28e   :  { %v1552_v40 = vpop.eup %1551  ;;  %v596_v0 = vadd.f32 %v594_v1, %v523_v6  ;;  %v661_v44 = vmul.f32 %v1550_v43, %v659_v38  ;;  %1567 = vpow2.f32 %v1401_v34  ;;  %v2122_v53 = vpop.f32.mrb[33].mxu0  ;;  %v795_v6 = vadd.f32 %v2004_v25, %v1932_v41 }
 0x28f   :  { %v1554_v59 = vpop.eup %1553  ;;  %v660_v56 = vsub.f32 1.0, %v1552_v40  ;;  %1569 = vtanh.f32 %v716_v49  ;;  %v1296_v51 = vpop.f32.mrb[34].mxu0  ;;  %v863_v49 = vadd.f32 %v2019_v36, %v1932_v41  ;;  %v1411_v1 = vmul.f32 -1.442695, %v1009_v26 }
 0x290   :  { %v1556_v3 = vpop.eup %1555  ;;  %v666_v30 = vmul.f32 %v2116_v45, %v661_v44  ;;  %v725_v16 = vadd.f32 1.0, %v1554_v59  ;;  %1571 = vpow2.f32 %v1405_v50  ;;  %v1298_v7 = vpop.f32.mrb[35].mxu0  ;;  %v2132_v19 = vadd.f32 %v1296_v51, %v1928_v31 }
 0x291   :  { %v1558_v10 = vpop.eup %1557  ;;  %v662_v14 = vmul.f32 %v1556_v3, %v660_v56  ;;  %1573 = vtanh.f32 %v791_v8  ;;  %v2135_v15 = vadd.f32 %v1298_v7, %v1932_v41  ;;  %v2145_v8 = vstv %s2127_s24 }
 0x292   :  { %v668_v20 = vadd.f32 %v666_v30, %v595_v28  ;;  %1575 = vrcp.f32 %v725_v16  ;;  %v803_v23 = vadd.f32 1.0, %v1558_v10  ;;  %v1560_v27 = vpop.eup %1559  ;;  %v867_v40 = vadd.f32 %v2028_v47, %v1932_v41 }
 0x293   :  { %v667_v25 = vmul.f32 %v2116_v45, %v662_v14  ;;  %1577 = vpow2.f32 %v1406_v21  ;;  %v804_v33 = vadd.f32 1.0, %v1560_v27  ;;  %v1562_v34 = vpop.eup %1561  ;;  %v1081_v59 = vadd.f32 %v2077_v54, %v1928_v31 }
 0x294   :  { %1579 = vrcp.f32 %v803_v23  ;;  %v875_v22 = vadd.f32 1.0, %v1562_v34  ;;  %v935_v3 = vadd.f32 %v2034_v58, %v1932_v41  ;;  %v1149_v47 = vadd.f32 %v2087_v4, %v1928_v31 }
 0x295   :  { %v669_v52 = vadd.f32 %v667_v25, %v596_v0  ;;  %1581 = vtanh.f32 %v795_v6  ;;  %v1416_v54 = vmul.f32 -1.442695, %v1081_v59  ;;  %v939_v23 = vadd.f32 %v2043_v60, %v1932_v41 }
 0x296   :  { %v1564_v28 = vpop.eup %1563  ;;  %1583 = vrcp.f32 %v804_v33  ;;  %v1153_v4 = vadd.f32 %v2093_v17, %v1928_v31 }
 0x297   :  { %v1566_v38 = vpop.eup %1565  ;;  %v732_v50 = vsub.f32 1.0, %v1564_v28  ;;  %1585 = vpow2.f32 %v1410_v32  ;;  %v1420_v32 = vmul.f32 -1.442695, %v1149_v47  ;;  %v1079_v47 = vadd.f32 %v2073_v48, %v1932_v41 }
 0x298   :  { %v1568_v43 = vpop.eup %1567  ;;  %1587 = vrcp.f32 %v875_v22  ;;  %v1007_v22 = vadd.f32 %v2055_v24, %v1932_v41  ;;  %v1225_v24 = vadd.f32 %v2110_v55, %v1928_v31  ;;  %v1083_v48 = vadd.f32 %v2080_v61, %v1932_v41 }
 0x299   :  { %v1570_v0 = vpop.eup %1569  ;;  %v734_v44 = vmul.f32 %v1566_v38, %v732_v50  ;;  %1589 = vtanh.f32 %v863_v49  ;;  %v876_v36 = vadd.f32 1.0, %v1568_v43 }
 0x29a   :  { %v1572_v56 = vpop.eup %1571  ;;  %1591 = vpow2.f32 %v1411_v1  ;;  %v1221_v1 = vadd.f32 %v2102_v39, %v1928_v31 }
 0x29b   :  { %v1574_v21 = vpop.eup %1573  ;;  %v739_v57 = vmul.f32 %v2145_v8, %v734_v44  ;;  %1593 = vrcp.f32 %v876_v36  ;;  %v947_v51 = vadd.f32 1.0, %v1572_v56 }
 0x29c   :  { %v1576_v30 = vpop.eup %1575  ;;  %1595 = vtanh.f32 %v867_v40  ;;  %v1011_v40 = vadd.f32 %v2064_v37, %v1932_v41  ;;  %v1425_v39 = vmul.f32 -1.442695, %v1221_v1  ;;  %v1293_v37 = vadd.f32 %v2120_v46, %v1928_v31 }
 0x29d   :  { %v1578_v16 = vpop.eup %1577  ;;  %v741_v6 = vadd.f32 %v739_v57, %v668_v20  ;;  %v733_v7 = vsub.f32 1.0, %v1576_v30  ;;  %1597 = vrcp.f32 %v947_v51 }
 0x29e   :  { %v1580_v10 = vpop.eup %1579  ;;  %v948_v14 = vadd.f32 1.0, %v1578_v16  ;;  %1599 = vpow2.f32 %v1415_v11 }
 0x29f   :  { %v1582_v26 = vpop.eup %1581  ;;  %v735_v27 = vmul.f32 %v1570_v0, %v733_v7  ;;  %v811_v25 = vsub.f32 1.0, %v1580_v10  ;;  %1601 = vtanh.f32 %v935_v3  ;;  %747 = vst [vmem:[#allocation9] sm:$0xff] %v741_v6  ;;  %v1421_v0 = vmul.f32 -1.442695, %v1153_v4 }
 0x2a0   :  { %v1584_v58 = vpop.eup %1583  ;;  %1603 = vrcp.f32 %v948_v14  ;;  %v1426_v7 = vmul.f32 -1.442695, %v1225_v24 }
 0x2a1   :  { %v1586_v20 = vpop.eup %1585  ;;  %v740_v33 = vmul.f32 %v2145_v8, %v735_v27  ;;  %v813_v34 = vmul.f32 %v1574_v21, %v811_v25  ;;  %v812_v49 = vsub.f32 1.0, %v1584_v58  ;;  %1605 = vpow2.f32 %v1416_v54 }
 0x2a2   :  { %v1588_v28 = vpop.eup %1587  ;;  %1607 = vtanh.f32 %v939_v23  ;;  %v1019_v60 = vadd.f32 1.0, %v1586_v20 }
 0x2a3   :  { %v1590_v5 = vpop.eup %1589  ;;  %v742_v38 = vadd.f32 %v740_v33, %v669_v52  ;;  %v814_v50 = vmul.f32 %v1582_v26, %v812_v49  ;;  %v883_v17 = vsub.f32 1.0, %v1588_v28  ;;  %v817_v21 = vmul.f32 %v813_v34, %v1991_v13 }
 0x2a4   :  { %v1592_v43 = vpop.eup %1591  ;;  %1609 = vrcp.f32 %v1019_v60  ;;  %v1430_v26 = vmul.f32 -1.442695, %v1293_v37  ;;  %v1431_v49 = vmul.f32 -1.442695, %v2132_v19  ;;  %v1151_v60 = vadd.f32 %v2091_v9, %v1932_v41 }
 0x2a5   :  { %v1594_v44 = vpop.eup %1593  ;;  %v885_v36 = vmul.f32 %v1590_v5, %v883_v17  ;;  %v1020_v59 = vadd.f32 1.0, %v1592_v43  ;;  %1611 = vpow2.f32 %v1420_v32  ;;  %748 = vst [vmem:[#allocation9 + $0x8] sm:$0xff] %v742_v38  ;;  %v818_v10 = vmul.f32 %v814_v50, %v1991_v13 }
 0x2a6   :  { %v1596_v56 = vpop.eup %1595  ;;  %v884_v11 = vsub.f32 1.0, %v1594_v44  ;;  %1613 = vtanh.f32 %v1007_v22  ;;  %v1155_v17 = vadd.f32 %v2098_v2, %v1932_v41  ;;  %v1227_v37 = vadd.f32 %v2113_v42, %v1932_v41 }
 0x2a7   :  { %v1598_v52 = vpop.eup %1597  ;;  %v889_v57 = vmul.f32 %v885_v36, %v1997_v18  ;;  %1615 = vrcp.f32 %v1020_v59  ;;  %v1223_v59 = vadd.f32 %v2104_v35, %v1932_v41 }
 0x2a8   :  { %v1600_v51 = vpop.eup %1599  ;;  %v886_v3 = vmul.f32 %v1596_v56, %v884_v11  ;;  %v955_v30 = vsub.f32 1.0, %v1598_v52  ;;  %1617 = vpow2.f32 %v1421_v0 }
 0x2a9   :  { %v1602_v55 = vpop.eup %1601  ;;  %v891_v16 = vadd.f32 %v889_v57, %v817_v21  ;;  %1619 = vtanh.f32 %v1011_v40  ;;  %v1091_v6 = vadd.f32 1.0, %v1600_v51 }
 0x2aa   :  { %v1604_v54 = vpop.eup %1603  ;;  %v890_v14 = vmul.f32 %v886_v3, %v1997_v18  ;;  %v957_v23 = vmul.f32 %v1602_v55, %v955_v30  ;;  %1621 = vpow2.f32 %v1425_v39  ;;  %v1295_v55 = vadd.f32 %v2122_v53, %v1932_v41 }
 0x2ab   :  { %v1606_v31 = vpop.eup %1605  ;;  %v956_v46 = vsub.f32 1.0, %v1604_v54  ;;  %1623 = vrcp.f32 %v1091_v6 }
 0x2ac   :  { %v1608_v27 = vpop.eup %1607  ;;  %v892_v25 = vadd.f32 %v890_v14, %v818_v10  ;;  %v961_v58 = vmul.f32 %v957_v23, %v2011_v29  ;;  %1625 = vtanh.f32 %v1079_v47  ;;  %v1092_v32 = vadd.f32 1.0, %v1606_v31 }
 0x2ad   :  { %v958_v4 = vmul.f32 %v1608_v27, %v956_v46  ;;  %1627 = vpow2.f32 %v1426_v7 }
 0x2ae   :  { %v1610_v13 = vpop.eup %1609  ;;  %v963_v20 = vadd.f32 %v961_v58, %v891_v16  ;;  %1629 = vrcp.f32 %v1092_v32 }
 0x2af   :  { %v1612_v18 = vpop.eup %1611  ;;  %v962_v33 = vmul.f32 %v958_v4, %v2011_v29  ;;  %v1027_v34 = vsub.f32 1.0, %v1610_v13  ;;  %1631 = vtanh.f32 %v1083_v48 }
 0x2b0   :  { %v1614_v61 = vpop.eup %1613  ;;  %v1163_v28 = vadd.f32 1.0, %v1612_v18  ;;  %1633 = vpow2.f32 %v1430_v26 }
 0x2b1   :  { %v1616_v22 = vpop.eup %1615  ;;  %v964_v1 = vadd.f32 %v962_v33, %v892_v25  ;;  %v1029_v5 = vmul.f32 %v1614_v61, %v1027_v34 }
 0x2b2   :  { %v1618_v38 = vpop.eup %1617  ;;  %v1028_v50 = vsub.f32 1.0, %v1616_v22  ;;  %1635 = vrcp.f32 %v1163_v28 }
 0x2b3   :  { %v1620_v29 = vpop.eup %1619  ;;  %v1033_v43 = vmul.f32 %v1029_v5, %v2037_v62  ;;  %v1164_v40 = vadd.f32 1.0, %v1618_v38  ;;  %1637 = vpow2.f32 %v1431_v49 }
 0x2b4   :  { %v1622_v19 = vpop.eup %1621  ;;  %v1030_v0 = vmul.f32 %v1620_v29, %v1028_v50  ;;  %1639 = vtanh.f32 %v1151_v60 }
 0x2b5   :  { %v1624_v44 = vpop.eup %1623  ;;  %v1035_v9 = vadd.f32 %v1033_v43, %v963_v20  ;;  %1641 = vrcp.f32 %v1164_v40  ;;  %v1235_v36 = vadd.f32 1.0, %v1622_v19 }
 0x2b6   :  { %v1626_v24 = vpop.eup %1625  ;;  %v1034_v56 = vmul.f32 %v1030_v0, %v2037_v62  ;;  %v1099_v11 = vsub.f32 1.0, %v1624_v44  ;;  %1643 = vtanh.f32 %v1155_v17 }
 0x2b7   :  { %v1628_v2 = vpop.eup %1627  ;;  %1645 = vrcp.f32 %v1235_v36 }
 0x2b8   :  { %v1630_v39 = vpop.eup %1629  ;;  %v1036_v52 = vadd.f32 %v1034_v56, %v964_v1  ;;  %v1101_v21 = vmul.f32 %v1626_v24, %v1099_v11  ;;  %v1236_v57 = vadd.f32 1.0, %v1628_v2  ;;  %1647 = vtanh.f32 %v1223_v59 }
 0x2b9   :  { %v1632_v51 = vpop.eup %1631  ;;  %v1100_v3 = vsub.f32 1.0, %v1630_v39 }
 0x2ba   :  { %v1634_v30 = vpop.eup %1633  ;;  %v1105_v35 = vmul.f32 %v1101_v21, %v2046_v12  ;;  %1649 = vrcp.f32 %v1236_v57 }
 0x2bb   :  { %v1102_v47 = vmul.f32 %v1632_v51, %v1100_v3  ;;  %v1307_v62 = vadd.f32 1.0, %v1634_v30  ;;  %1651 = vtanh.f32 %v1227_v37 }
 0x2bc   :  { %v1636_v16 = vpop.eup %1635  ;;  %v1107_v6 = vadd.f32 %v1105_v35, %v1035_v9 }
 0x2bd   :  { %v1638_v7 = vpop.eup %1637  ;;  %v1106_v54 = vmul.f32 %v1102_v47, %v2046_v12  ;;  %v1171_v10 = vsub.f32 1.0, %v1636_v16  ;;  %1653 = vrcp.f32 %v1307_v62 }
 0x2be   :  { %v1640_v42 = vpop.eup %1639  ;;  %v1308_v14 = vadd.f32 1.0, %v1638_v7  ;;  %1655 = vtanh.f32 %v1295_v55 }
 0x2bf   :  { %v1642_v23 = vpop.eup %1641  ;;  %v1108_v31 = vadd.f32 %v1106_v54, %v1036_v52  ;;  %v1173_v46 = vmul.f32 %v1640_v42, %v1171_v10 }
 0x2c0   :  { %v1644_v48 = vpop.eup %1643  ;;  %v1172_v26 = vsub.f32 1.0, %v1642_v23  ;;  %1657 = vrcp.f32 %v1308_v14 }
 0x2c1   :  { %v1646_v27 = vpop.eup %1645  ;;  %v1177_v41 = vmul.f32 %v1173_v46, %v2083_v63  ;;  %1659 = vtanh.f32 %v2135_v15 }
 0x2c2   :  { %v1174_v53 = vmul.f32 %v1644_v48, %v1172_v26  ;;  %v1243_v25 = vsub.f32 1.0, %v1646_v27  ;;  %v1648_v58 = vpop.eup %1647 }
 0x2c3   :  { %v1179_v12 = vadd.f32 %v1177_v41, %v1107_v6 }
 0x2c4   :  { %v1650_v32 = vpop.eup %1649  ;;  %v1178_v4 = vmul.f32 %v1174_v53, %v2083_v63  ;;  %v1245_v13 = vmul.f32 %v1648_v58, %v1243_v25 }
 0x2c5   :  { %v1244_v20 = vsub.f32 1.0, %v1650_v32  ;;  %v1652_v18 = vpop.eup %1651 }
 0x2c6   :  { %v1180_v33 = vadd.f32 %v1178_v4, %v1108_v31  ;;  %v1249_v34 = vmul.f32 %v1245_v13, %v2116_v45 }
 0x2c7   :  { %v1654_v49 = vpop.eup %1653  ;;  %v1246_v61 = vmul.f32 %v1652_v18, %v1244_v20 }
 0x2c8   :  { %v1251_v28 = vadd.f32 %v1249_v34, %v1179_v12  ;;  %v1315_v60 = vsub.f32 1.0, %v1654_v49  ;;  %v1656_v22 = vpop.eup %1655 }
 0x2c9   :  { %v1250_v1 = vmul.f32 %v1246_v61, %v2116_v45 }
 0x2ca   :  { %v1658_v5 = vpop.eup %1657  ;;  %v1317_v15 = vmul.f32 %v1656_v22, %v1315_v60 }
 0x2cb   :  { %v1252_v38 = vadd.f32 %v1250_v1, %v1180_v33  ;;  %v1316_v50 = vsub.f32 1.0, %v1658_v5  ;;  %v1660_v17 = vpop.eup %1659 }
 0x2cc   :  { %v1321_v63 = vmul.f32 %v1317_v15, %v2145_v8 }
 0x2cd   :  { %v1318_v29 = vmul.f32 %v1660_v17, %v1316_v50 }
 0x2ce   :  { %v1323_v43 = vadd.f32 %v1321_v63, %v1251_v28 }
 0x2cf   :  { %v1322_v40 = vmul.f32 %v1318_v29, %v2145_v8 }
 0x2d0   :  { %1330 = vst [vmem:[#allocation9 + $0x10] sm:$0xff] %v1323_v43 }
 0x2d1   :  { %v1324_v19 = vadd.f32 %v1322_v40, %v1252_v38 }
 0x2d3   :  { %1331 = vst [vmem:[#allocation9 + $0x18] sm:$0xff] %v1324_v19 }
 0x2d4   :  { %1726 = shalt.err (!%p1723_p9)
}
 0x2d5   :  { %s1727_s2 = scalar_lea.hbm %s2220_s5, 512 }
 0x2d6   :  { %p1728_p10 = scmp.ne.s32.totalorder %s2220_s5, %s1727_s2  ;;  %p1731_p11 = scmp.lt.u32.totalorder %s1727_s2, %s2220_s5 }
 0x2d8   :  { %p1733_p12 = pnand %p1731_p11, %p1728_p10 }
 0x2da   :  { %1736 = shalt.err (!%p1733_p12)
}
 0x2db   :  { %s1769_s7 = smov 128   ;;  %s1770_s8 = smov 8  }
 0x2dc   :  { %1343 = dma.vmem_to_hbm [thread:$0]  %s1338_s1, 512, %s2220_s5, [#allocation4], %s1769_s7, %s1769_s7, %s1770_s8  }
 0x2dd   :  { %1743 = dma.done.wait [#allocation4], 512  }
 0x2de   :  { %1744 = vsyncadd [#allocation4], 4294966784 }
 0x2df   :  { %1347 = vsyncpa [#allocation3], 1 }
 0x2e0   :  { %1348 = vsyncpa [#allocation8], 1 }
 0x2e1   :  { %1349 = vsyncpa [#allocation4], 1 }
 0x2e2   :  { %1350 = vsyncpa [#allocation5], 1 }

</bundles_post_ra>
